<compile_context>
chip_gen: v5e
topology: v5e:2x2
jax: 0.10.0
libtpu: 0.0.40
codegen_flags: <defaults>
</compile_context>

<pallas_src>
import functools
import math

import jax
import jax.numpy as jnp
from jax import lax
from jax.experimental import pallas as pl
from jax.experimental.pallas import tpu as pltpu

_LANE = 128


def _round_up(n, m):
    return ((n + m - 1) // m) * m


def _critics_actor_kernel(x_ref,
                          rw1_ref, rb1_ref, rwh_ref, rbh_ref,
                          wf_ref, bf_ref, hs_ref, tail_ref,
                          out_ref,
                          *, num_root_hidden, num_end_hidden, num_actor):
    f32 = jnp.float32
    bf16 = jnp.bfloat16

    # ---------------- RootNet: bf16 MXU matmuls, f32 accumulation -------------------
    x = x_ref[...]                                                       # (bb, I) bf16
    h = jnp.dot(x, rw1_ref[...], preferred_element_type=f32) + rb1_ref[...]
    h = jnp.maximum(h, 0.0)

    # Shared hidden weight / bias hoisted out of the repeat loop.
    rwh = rwh_ref[...]
    rbh = rbh_ref[...]
    # TODO(synk): switch to lax.fori_loop(..., unroll=True) if num_root_hidden gets large.
    for _ in range(num_root_hidden):
        h = jnp.maximum(
            jnp.dot(h.astype(bf16), rwh, preferred_element_type=f32) + rbh, 0.0)

    # ------ RootNet last layer fused (in wrapper) with Actor|Critic first layers -----
    # One (bb,H)@(H,4) matmul replaces the (bb,H)@(H,H) root-last matmul plus the two
    # (bb,H)@(H,2) head first-layer matmuls.
    h4 = jnp.dot(h.astype(bf16), wf_ref[...], preferred_element_type=f32) + bf_ref[...]
    h4 = jnp.maximum(h4, 0.0)                                            # (bb, 4)
    a0, a1 = h4[:, 0:1], h4[:, 1:2]                                      # actor columns
    c0, c1 = h4[:, 2:3], h4[:, 3:4]                                      # critic columns

    # -------- Tiny head layers on the VPU; weights/biases are SMEM scalars ----------
    awh00, awh01, awh10, awh11 = hs_ref[0], hs_ref[1], hs_ref[2], hs_ref[3]
    abh0, abh1 = hs_ref[4], hs_ref[5]
    awb0, awb1, abb = hs_ref[6], hs_ref[7], hs_ref[8]
    cwh00, cwh01, cwh10, cwh11 = hs_ref[9], hs_ref[10], hs_ref[11], hs_ref[12]
    cbh0, cbh1 = hs_ref[13], hs_ref[14]
    cwb0, cwb1, cbb = hs_ref[15], hs_ref[16], hs_ref[17]

    for _ in range(num_end_hidden - 1):          # shared 2x2 hidden layer, E-1 times
        na0 = jnp.maximum(a0 * awh00 + a1 * awh10 + abh0, 0.0)
        na1 = jnp.maximum(a0 * awh01 + a1 * awh11 + abh1, 0.0)
        nc0 = jnp.maximum(c0 * cwh00 + c1 * cwh10 + cbh0, 0.0)
        nc1 = jnp.maximum(c0 * cwh01 + c1 * cwh11 + cbh1, 0.0)
        a0, a1, c0, c1 = na0, na1, nc0, nc1

    ab = jnp.maximum(a0 * awb0 + a1 * awb1 + abb, 0.0)                   # (bb, 1)
    cb = jnp.maximum(c0 * cwb0 + c1 * cwb1 + cbb, 0.0)                   # (bb, 1)

    # -------- Lane-dense fused last layer + lane-masked softmax ---------------------
    # tail_ref rows: 0 = actor last-layer weight (lanes [0,A)), 1 = critic last-layer
    # weight (lanes [A,A+C)), 2 = both biases.  Actor logits and critic value land in
    # ONE unmasked lane-dense (bb, P) store.
    combined = ab * tail_ref[0:1, :] + cb * tail_ref[1:2, :] + tail_ref[2:3, :]

    lane = lax.broadcasted_iota(jnp.int32, combined.shape, 1)
    actor_mask = lane < num_actor
    logits = jnp.where(actor_mask, combined, -jnp.inf)
    m = jnp.max(logits, axis=-1, keepdims=True)
    e = jnp.exp(logits - m)                      # masked lanes -> exp(-inf) = 0
    probs = e * pl.reciprocal(jnp.sum(e, axis=-1, keepdims=True), approx=True)
    out_ref[...] = jnp.where(actor_mask, probs, combined)


def critics_actor_forward(x, params, num_root_hidden, num_end_hidden, block_b=128):
    B, I = x.shape
    H = params["rw1"].shape[1]
    A = params["awl"].shape[1]
    C = params["cwl"].shape[1]
    P = _round_up(max(A + C, 1), _LANE)          # lane-dense combined output width

    # Batch tile: MXU-aligned, and >=2 grid steps when the batch allows it so the
    # BlockSpec pipeline overlaps DMA/compute and both TensorCores get work.
    if B >= 2 * block_b:
        bb = block_b
    elif B >= 16:
        bb = _round_up((B + 1) // 2, 8)
    else:
        bb = _round_up(max(B, 1), 8)
    Bp = _round_up(B, bb)

    # Pad batch with zeros (well-defined values in the padded tail) and cast to bf16.
    xp = jnp.zeros((Bp, I), jnp.float32).at[:B].set(x).astype(jnp.bfloat16)

    # RootNet weights in bf16 (halves DMA bytes + VMEM residency; f32 accumulation).
    rw1 = params["rw1"].astype(jnp.bfloat16)
    rwh = params["rwh"].astype(jnp.bfloat16)
    rb1, rbh = params["rb1"], params["rbh"]

    # Fuse RootNet last Linear(H,H) with the Actor/Critic first Linear(H,2)s (f32 fold,
    # then cast): removes an (H,H) MXU pass per tile and an (H,H) weight from VMEM.
    w_head = jnp.concatenate([params["aw1"], params["cw1"]], axis=1)     # (H, 4) f32
    b_head = jnp.concatenate([params["ab1"], params["cb1"]], axis=1)     # (1, 4) f32
    w_fused = (params["rwl"] @ w_head).astype(jnp.bfloat16)              # (H, 4) bf16
    b_fused = (params["rbl"] @ w_head + b_head).astype(jnp.float32)      # (1, 4) f32

    # 18 tiny head scalars, packed once into SMEM (no padded (8,128) VMEM tiles / DMAs).
    hs = jnp.concatenate([
        params["awh"].reshape(-1), params["abh"].reshape(-1),
        params["awb"].reshape(-1), params["abb"].reshape(-1),
        params["cwh"].reshape(-1), params["cbh"].reshape(-1),
        params["cwb"].reshape(-1), params["cbb"].reshape(-1),
    ]).astype(jnp.float32)

    # Lane-dense padded last-layer weights / bias packed into one (3, P) array.
    tail = (jnp.zeros((3, P), jnp.float32)
            .at[0, :A].set(params["awl"][0])
            .at[1, A:A + C].set(params["cwl"][0])
            .at[2, :A].set(params["abl"][0])
            .at[2, A:A + C].set(params["cbl"][0]))

    kernel = functools.partial(
        _critics_actor_kernel,
        num_root_hidden=num_root_hidden,
        num_end_hidden=num_end_hidden,
        num_actor=A,
    )

    const = lambda i: (0, 0)
    out = pl.pallas_call(
        kernel,
        out_shape=jax.ShapeDtypeStruct((Bp, P), jnp.float32),
        grid_spec=pltpu.PrefetchScalarGridSpec(
            num_scalar_prefetch=0,
            grid=(Bp // bb,),
            in_specs=[
                pl.BlockSpec((bb, I), lambda i: (i, 0)),                 # x tile
                pl.BlockSpec((I, H), const),                             # rw1 (bf16)
                pl.BlockSpec((1, H), const),                             # rb1
                pl.BlockSpec((H, H), const),                             # rwh (bf16)
                pl.BlockSpec((1, H), const),                             # rbh
                pl.BlockSpec((H, 4), const),                             # fused root-last|head W
                pl.BlockSpec((1, 4), const),                             # fused root-last|head b
                pl.BlockSpec(memory_space=pltpu.MemorySpace.SMEM),       # head scalars
                pl.BlockSpec((3, P), const),                             # awl|cwl|bias (padded)
            ],
            out_specs=pl.BlockSpec((bb, P), lambda i: (i, 0)),
        ),
        compiler_params=pltpu.CompilerParams(
            dimension_semantics=("parallel",),
            vmem_limit_bytes=32 * 1024 * 1024,
        ),
    )(xp, rw1, rb1, rwh, rbh, w_fused, b_fused, hs, tail)

    actor = out[:B, :A]
    critic = out[:B, A:A + C]
    return actor, critic


def _uniform(key, shape, fan_in):
    bound = 1.0 / math.sqrt(fan_in)
    return jax.random.uniform(key, shape, jnp.float32, -bound, bound)


def init_params(key, inputs, actor_outputs, critic_outputs=1):
    """PyTorch-style U(+-1/sqrt(fan_in)) init. Weights stored (in, out); biases (1, out)."""
    H = inputs * 4            # RootNet hidden / output dim
    HD = 2                    # Actor/Critic hidden_dim
    HD2 = HD // 2             # = 1
    layer_defs = [
        ("rw1", "rb1", (inputs, H)), ("rwh", "rbh", (H, H)), ("rwl", "rbl", (H, H)),
        ("aw1", "ab1", (H, HD)), ("awh", "abh", (HD, HD)),
        ("awb", "abb", (HD, HD2)), ("awl", "abl", (HD2, actor_outputs)),
        ("cw1", "cb1", (H, HD)), ("cwh", "cbh", (HD, HD)),
        ("cwb", "cbb", (HD, HD2)), ("cwl", "cbl", (HD2, critic_outputs)),
    ]
    params = {}
    keys = jax.random.split(key, 2 * len(layer_defs))
    for idx, (wn, bn, (fi, fo)) in enumerate(layer_defs):
        params[wn] = _uniform(keys[2 * idx], (fi, fo), fi)
        params[bn] = _uniform(keys[2 * idx + 1], (1, fo), fi)
    return params


def reference_forward(x, p, R, E):
    """Pure-JAX reference of the PyTorch eval-mode forward (unfused structure), using the
    same bf16 operand rounding (f32 accumulation) for the large matmuls as the kernel."""
    bf = lambda a: a.astype(jnp.bfloat16).astype(jnp.float32)
    lin_bf = lambda h, w, b: jnp.dot(bf(h), bf(w), preferred_element_type=jnp.float32) + b
    lin = lambda h, w, b: h @ w + b

    h = jax.nn.relu(lin_bf(x, p["rw1"], p["rb1"]))
    for _ in range(R):
        h = jax.nn.relu(lin_bf(h, p["rwh"], p["rbh"]))
    root = lin_bf(h, p["rwl"], p["rbl"])

    a = jax.nn.relu(lin_bf(root, p["aw1"], p["ab1"]))
    for _ in range(E - 1):
        a = jax.nn.relu(lin(a, p["awh"], p["abh"]))
    a = jax.nn.relu(lin(a, p["awb"], p["abb"]))
    actor = jax.nn.softmax(lin(a, p["awl"], p["abl"]), axis=-1)

    c = jax.nn.relu(lin_bf(root, p["cw1"], p["cb1"]))
    for _ in range(E - 1):
        c = jax.nn.relu(lin(c, p["cwh"], p["cbh"]))
    c = jax.nn.relu(lin(c, p["cwb"], p["cbb"]))
    critic = lin(c, p["cwl"], p["cbl"])
    return actor, critic


if __name__ == "__main__":
    INPUTS = 32               # -> RootNet hidden/output H = 128 (one full lane group)
    ACTOR_OUTPUTS = 4
    CRITIC_OUTPUTS = 1
    NUM_HIDDEN_LAYERS_ROOT = 2
    NUM_HIDDEN_LAYERS_END = 2
    BATCH = 256               # two 128-row MXU tiles -> 2 parallel grid steps

    key = jax.random.PRNGKey(0)
    k_x, k_p = jax.random.split(key)
    x = jax.random.normal(k_x, (BATCH, INPUTS), jnp.float32)
    params = init_params(k_p, INPUTS, ACTOR_OUTPUTS, CRITIC_OUTPUTS)

    actor, critic = critics_actor_forward(
        x, params, NUM_HIDDEN_LAYERS_ROOT, NUM_HIDDEN_LAYERS_END, block_b=128)
    jax.block_until_ready((actor, critic))

    actor_ref, critic_ref = reference_forward(
        x, params, NUM_HIDDEN_LAYERS_ROOT, NUM_HIDDEN_LAYERS_END)

    assert actor.shape == (BATCH, ACTOR_OUTPUTS) and critic.shape == (BATCH, CRITIC_OUTPUTS)
    assert bool(jnp.all(jnp.isfinite(actor))) and bool(jnp.all(jnp.isfinite(critic)))
    assert jnp.allclose(actor, actor_ref, rtol=2e-2, atol=5e-3), (
        float(jnp.max(jnp.abs(actor - actor_ref))))
    assert jnp.allclose(critic, critic_ref, rtol=2e-2, atol=1e-2), (
        float(jnp.max(jnp.abs(critic - critic_ref))))
    assert jnp.allclose(jnp.sum(actor, axis=-1), 1.0, atol=5e-3)

    print("KERNEL_OK")
</pallas_src>

<mosaic_0001>
module attributes {stable_mosaic.version = 11 : i64} {
  func.func @_critics_actor_kernel(%arg0: i32, %arg1: memref<128x32xbf16, #tpu.memory_space<vmem>>, %arg2: memref<32x128xbf16, #tpu.memory_space<vmem>>, %arg3: memref<1x128xf32, #tpu.memory_space<vmem>>, %arg4: memref<128x128xbf16, #tpu.memory_space<vmem>>, %arg5: memref<1x128xf32, #tpu.memory_space<vmem>>, %arg6: memref<128x4xbf16, #tpu.memory_space<vmem>>, %arg7: memref<1x4xf32, #tpu.memory_space<vmem>>, %arg8: memref<18xf32, #tpu.memory_space<smem>>, %arg9: memref<3x128xf32, #tpu.memory_space<vmem>>, %arg10: memref<128x128xf32, #tpu.memory_space<vmem>>) attributes {dimension_semantics = [#tpu.dimension_semantics<parallel>], iteration_bounds = array<i64: 2>, scalar_prefetch = 0 : i64, scratch_operands = 0 : i64, tpu.core_type = #tpu.core_type<tc>, window_params = [{transform_indices = @transform_0, window_bounds = array<i64: 128, 32>}, {pipeline_mode = #tpu.pipeline_mode<synchronous>, transform_indices = @transform_1, window_bounds = array<i64: 32, 128>}, {pipeline_mode = #tpu.pipeline_mode<synchronous>, transform_indices = @transform_2, window_bounds = array<i64: 1, 128>}, {pipeline_mode = #tpu.pipeline_mode<synchronous>, transform_indices = @transform_3, window_bounds = array<i64: 128, 128>}, {pipeline_mode = #tpu.pipeline_mode<synchronous>, transform_indices = @transform_4, window_bounds = array<i64: 1, 128>}, {pipeline_mode = #tpu.pipeline_mode<synchronous>, transform_indices = @transform_5, window_bounds = array<i64: 128, 4>}, {pipeline_mode = #tpu.pipeline_mode<synchronous>, transform_indices = @transform_6, window_bounds = array<i64: 1, 4>}, {transform_indices = @transform_7, window_bounds = array<i64: 18>}, {pipeline_mode = #tpu.pipeline_mode<synchronous>, transform_indices = @transform_8, window_bounds = array<i64: 3, 128>}, {transform_indices = @transform_9, window_bounds = array<i64: 128, 128>}]} {
    %c0 = arith.constant 0 : index
    %c0_0 = arith.constant 0 : index
    %0 = vector.load %arg1[%c0, %c0_0] : memref<128x32xbf16, #tpu.memory_space<vmem>>, vector<128x32xbf16>
    %c0_1 = arith.constant 0 : index
    %c0_2 = arith.constant 0 : index
    %1 = vector.load %arg2[%c0_1, %c0_2] : memref<32x128xbf16, #tpu.memory_space<vmem>>, vector<32x128xbf16>
    %cst = arith.constant dense<0.000000e+00> : vector<128x128xf32>
    %2 = tpu.matmul %0, %1, %cst {dimension_numbers = #tpu.dot_dimension_numbers<[1], [0], [0], [1], [0, 0, 1, 1], [], []>} : vector<128x32xbf16>, vector<32x128xbf16>, vector<128x128xf32> -> vector<128x128xf32>
    %c0_3 = arith.constant 0 : index
    %c0_4 = arith.constant 0 : index
    %3 = vector.load %arg3[%c0_3, %c0_4] : memref<1x128xf32, #tpu.memory_space<vmem>>, vector<1x128xf32>
    %4 = vector.broadcast %3 : vector<1x128xf32> to vector<128x128xf32>
    %5 = arith.addf %2, %4 : vector<128x128xf32>
    %cst_5 = arith.constant 0.000000e+00 : f32
    %6 = vector.broadcast %cst_5 : f32 to vector<128x128xf32>
    %7 = arith.maximumf %5, %6 : vector<128x128xf32>
    %c0_6 = arith.constant 0 : index
    %c0_7 = arith.constant 0 : index
    %8 = vector.load %arg4[%c0_6, %c0_7] : memref<128x128xbf16, #tpu.memory_space<vmem>>, vector<128x128xbf16>
    %c0_8 = arith.constant 0 : index
    %c0_9 = arith.constant 0 : index
    %9 = vector.load %arg5[%c0_8, %c0_9] : memref<1x128xf32, #tpu.memory_space<vmem>>, vector<1x128xf32>
    %10 = arith.truncf %7 : vector<128x128xf32> to vector<128x128xbf16>
    %cst_10 = arith.constant dense<0.000000e+00> : vector<128x128xf32>
    %11 = tpu.matmul %10, %8, %cst_10 {dimension_numbers = #tpu.dot_dimension_numbers<[1], [0], [0], [1], [0, 0, 1, 1], [], []>} : vector<128x128xbf16>, vector<128x128xbf16>, vector<128x128xf32> -> vector<128x128xf32>
    %12 = vector.broadcast %9 : vector<1x128xf32> to vector<128x128xf32>
    %13 = arith.addf %11, %12 : vector<128x128xf32>
    %cst_11 = arith.constant 0.000000e+00 : f32
    %14 = vector.broadcast %cst_11 : f32 to vector<128x128xf32>
    %15 = arith.maximumf %13, %14 : vector<128x128xf32>
    %16 = arith.truncf %15 : vector<128x128xf32> to vector<128x128xbf16>
    %cst_12 = arith.constant dense<0.000000e+00> : vector<128x128xf32>
    %17 = tpu.matmul %16, %8, %cst_12 {dimension_numbers = #tpu.dot_dimension_numbers<[1], [0], [0], [1], [0, 0, 1, 1], [], []>} : vector<128x128xbf16>, vector<128x128xbf16>, vector<128x128xf32> -> vector<128x128xf32>
    %18 = vector.broadcast %9 : vector<1x128xf32> to vector<128x128xf32>
    %19 = arith.addf %17, %18 : vector<128x128xf32>
    %cst_13 = arith.constant 0.000000e+00 : f32
    %20 = vector.broadcast %cst_13 : f32 to vector<128x128xf32>
    %21 = arith.maximumf %19, %20 : vector<128x128xf32>
    %22 = arith.truncf %21 : vector<128x128xf32> to vector<128x128xbf16>
    %c0_14 = arith.constant 0 : index
    %c0_15 = arith.constant 0 : index
    %23 = vector.load %arg6[%c0_14, %c0_15] : memref<128x4xbf16, #tpu.memory_space<vmem>>, vector<128x4xbf16>
    %cst_16 = arith.constant dense<0.000000e+00> : vector<128x4xf32>
    %24 = tpu.matmul %22, %23, %cst_16 {dimension_numbers = #tpu.dot_dimension_numbers<[1], [0], [0], [1], [0, 0, 1, 1], [], []>} : vector<128x128xbf16>, vector<128x4xbf16>, vector<128x4xf32> -> vector<128x4xf32>
    %c0_17 = arith.constant 0 : index
    %c0_18 = arith.constant 0 : index
    %25 = vector.load %arg7[%c0_17, %c0_18] : memref<1x4xf32, #tpu.memory_space<vmem>>, vector<1x4xf32>
    %26 = vector.broadcast %25 : vector<1x4xf32> to vector<128x4xf32>
    %27 = arith.addf %24, %26 : vector<128x4xf32>
    %cst_19 = arith.constant 0.000000e+00 : f32
    %28 = vector.broadcast %cst_19 : f32 to vector<128x4xf32>
    %29 = arith.maximumf %27, %28 : vector<128x4xf32>
    %30 = vector.extract_strided_slice %29 {offsets = [0, 0], sizes = [128, 1], strides = [1, 1]} : vector<128x4xf32> to vector<128x1xf32>
    %31 = vector.extract_strided_slice %29 {offsets = [0, 1], sizes = [128, 1], strides = [1, 1]} : vector<128x4xf32> to vector<128x1xf32>
    %32 = vector.extract_strided_slice %29 {offsets = [0, 2], sizes = [128, 1], strides = [1, 1]} : vector<128x4xf32> to vector<128x1xf32>
    %33 = vector.extract_strided_slice %29 {offsets = [0, 3], sizes = [128, 1], strides = [1, 1]} : vector<128x4xf32> to vector<128x1xf32>
    %c0_20 = arith.constant 0 : index
    %34 = memref.load %arg8[%c0_20] : memref<18xf32, #tpu.memory_space<smem>>
    %c1 = arith.constant 1 : index
    %35 = memref.load %arg8[%c1] : memref<18xf32, #tpu.memory_space<smem>>
    %c2 = arith.constant 2 : index
    %36 = memref.load %arg8[%c2] : memref<18xf32, #tpu.memory_space<smem>>
    %c3 = arith.constant 3 : index
    %37 = memref.load %arg8[%c3] : memref<18xf32, #tpu.memory_space<smem>>
    %c4 = arith.constant 4 : index
    %38 = memref.load %arg8[%c4] : memref<18xf32, #tpu.memory_space<smem>>
    %c5 = arith.constant 5 : index
    %39 = memref.load %arg8[%c5] : memref<18xf32, #tpu.memory_space<smem>>
    %c6 = arith.constant 6 : index
    %40 = memref.load %arg8[%c6] : memref<18xf32, #tpu.memory_space<smem>>
    %c7 = arith.constant 7 : index
    %41 = memref.load %arg8[%c7] : memref<18xf32, #tpu.memory_space<smem>>
    %c8 = arith.constant 8 : index
    %42 = memref.load %arg8[%c8] : memref<18xf32, #tpu.memory_space<smem>>
    %c9 = arith.constant 9 : index
    %43 = memref.load %arg8[%c9] : memref<18xf32, #tpu.memory_space<smem>>
    %c10 = arith.constant 10 : index
    %44 = memref.load %arg8[%c10] : memref<18xf32, #tpu.memory_space<smem>>
    %c11 = arith.constant 11 : index
    %45 = memref.load %arg8[%c11] : memref<18xf32, #tpu.memory_space<smem>>
    %c12 = arith.constant 12 : index
    %46 = memref.load %arg8[%c12] : memref<18xf32, #tpu.memory_space<smem>>
    %c13 = arith.constant 13 : index
    %47 = memref.load %arg8[%c13] : memref<18xf32, #tpu.memory_space<smem>>
    %c14 = arith.constant 14 : index
    %48 = memref.load %arg8[%c14] : memref<18xf32, #tpu.memory_space<smem>>
    %c15 = arith.constant 15 : index
    %49 = memref.load %arg8[%c15] : memref<18xf32, #tpu.memory_space<smem>>
    %c16 = arith.constant 16 : index
    %50 = memref.load %arg8[%c16] : memref<18xf32, #tpu.memory_space<smem>>
    %c17 = arith.constant 17 : index
    %51 = memref.load %arg8[%c17] : memref<18xf32, #tpu.memory_space<smem>>
    %52 = vector.broadcast %34 : f32 to vector<128x1xf32>
    %53 = arith.mulf %30, %52 : vector<128x1xf32>
    %54 = vector.broadcast %36 : f32 to vector<128x1xf32>
    %55 = arith.mulf %31, %54 : vector<128x1xf32>
    %56 = arith.addf %53, %55 : vector<128x1xf32>
    %57 = vector.broadcast %38 : f32 to vector<128x1xf32>
    %58 = arith.addf %56, %57 : vector<128x1xf32>
    %cst_21 = arith.constant 0.000000e+00 : f32
    %59 = vector.broadcast %cst_21 : f32 to vector<128x1xf32>
    %60 = arith.maximumf %58, %59 : vector<128x1xf32>
    %61 = vector.broadcast %35 : f32 to vector<128x1xf32>
    %62 = arith.mulf %30, %61 : vector<128x1xf32>
    %63 = vector.broadcast %37 : f32 to vector<128x1xf32>
    %64 = arith.mulf %31, %63 : vector<128x1xf32>
    %65 = arith.addf %62, %64 : vector<128x1xf32>
    %66 = vector.broadcast %39 : f32 to vector<128x1xf32>
    %67 = arith.addf %65, %66 : vector<128x1xf32>
    %cst_22 = arith.constant 0.000000e+00 : f32
    %68 = vector.broadcast %cst_22 : f32 to vector<128x1xf32>
    %69 = arith.maximumf %67, %68 : vector<128x1xf32>
    %70 = vector.broadcast %43 : f32 to vector<128x1xf32>
    %71 = arith.mulf %32, %70 : vector<128x1xf32>
    %72 = vector.broadcast %45 : f32 to vector<128x1xf32>
    %73 = arith.mulf %33, %72 : vector<128x1xf32>
    %74 = arith.addf %71, %73 : vector<128x1xf32>
    %75 = vector.broadcast %47 : f32 to vector<128x1xf32>
    %76 = arith.addf %74, %75 : vector<128x1xf32>
    %cst_23 = arith.constant 0.000000e+00 : f32
    %77 = vector.broadcast %cst_23 : f32 to vector<128x1xf32>
    %78 = arith.maximumf %76, %77 : vector<128x1xf32>
    %79 = vector.broadcast %44 : f32 to vector<128x1xf32>
    %80 = arith.mulf %32, %79 : vector<128x1xf32>
    %81 = vector.broadcast %46 : f32 to vector<128x1xf32>
    %82 = arith.mulf %33, %81 : vector<128x1xf32>
    %83 = arith.addf %80, %82 : vector<128x1xf32>
    %84 = vector.broadcast %48 : f32 to vector<128x1xf32>
    %85 = arith.addf %83, %84 : vector<128x1xf32>
    %cst_24 = arith.constant 0.000000e+00 : f32
    %86 = vector.broadcast %cst_24 : f32 to vector<128x1xf32>
    %87 = arith.maximumf %85, %86 : vector<128x1xf32>
    %88 = vector.broadcast %40 : f32 to vector<128x1xf32>
    %89 = arith.mulf %60, %88 : vector<128x1xf32>
    %90 = vector.broadcast %41 : f32 to vector<128x1xf32>
    %91 = arith.mulf %69, %90 : vector<128x1xf32>
    %92 = arith.addf %89, %91 : vector<128x1xf32>
    %93 = vector.broadcast %42 : f32 to vector<128x1xf32>
    %94 = arith.addf %92, %93 : vector<128x1xf32>
    %cst_25 = arith.constant 0.000000e+00 : f32
    %95 = vector.broadcast %cst_25 : f32 to vector<128x1xf32>
    %96 = arith.maximumf %94, %95 : vector<128x1xf32>
    %97 = vector.broadcast %49 : f32 to vector<128x1xf32>
    %98 = arith.mulf %78, %97 : vector<128x1xf32>
    %99 = vector.broadcast %50 : f32 to vector<128x1xf32>
    %100 = arith.mulf %87, %99 : vector<128x1xf32>
    %101 = arith.addf %98, %100 : vector<128x1xf32>
    %102 = vector.broadcast %51 : f32 to vector<128x1xf32>
    %103 = arith.addf %101, %102 : vector<128x1xf32>
    %cst_26 = arith.constant 0.000000e+00 : f32
    %104 = vector.broadcast %cst_26 : f32 to vector<128x1xf32>
    %105 = arith.maximumf %103, %104 : vector<128x1xf32>
    %c0_27 = arith.constant 0 : index
    %c0_28 = arith.constant 0 : index
    %106 = vector.load %arg9[%c0_27, %c0_28] : memref<3x128xf32, #tpu.memory_space<vmem>>, vector<1x128xf32>
    %107 = vector.broadcast %96 : vector<128x1xf32> to vector<128x128xf32>
    %108 = vector.broadcast %106 : vector<1x128xf32> to vector<128x128xf32>
    %109 = arith.mulf %107, %108 : vector<128x128xf32>
    %c1_29 = arith.constant 1 : index
    %c0_30 = arith.constant 0 : index
    %110 = vector.load %arg9[%c1_29, %c0_30] : memref<3x128xf32, #tpu.memory_space<vmem>>, vector<1x128xf32>
    %111 = vector.broadcast %105 : vector<128x1xf32> to vector<128x128xf32>
    %112 = vector.broadcast %110 : vector<1x128xf32> to vector<128x128xf32>
    %113 = arith.mulf %111, %112 : vector<128x128xf32>
    %114 = arith.addf %109, %113 : vector<128x128xf32>
    %c2_31 = arith.constant 2 : index
    %c0_32 = arith.constant 0 : index
    %115 = vector.load %arg9[%c2_31, %c0_32] : memref<3x128xf32, #tpu.memory_space<vmem>>, vector<1x128xf32>
    %116 = vector.broadcast %115 : vector<1x128xf32> to vector<128x128xf32>
    %117 = arith.addf %114, %116 : vector<128x128xf32>
    %118 = tpu.iota {dimensions = array<i32: 1>} : vector<128x128xi32>
    %c4_i32 = arith.constant 4 : i32
    %119 = vector.broadcast %c4_i32 : i32 to vector<128x128xi32>
    %120 = arith.cmpi slt, %118, %119 : vector<128x128xi32>
    %cst_33 = arith.constant 0xFF800000 : f32
    %121 = vector.broadcast %cst_33 : f32 to vector<128x128xf32>
    %122 = arith.select %120, %117, %121 : vector<128x128xi1>, vector<128x128xf32>
    %cst_34 = arith.constant dense<0xFF800000> : vector<128xf32>
    %123 = vector.multi_reduction <maximumf>, %122, %cst_34 [1] : vector<128x128xf32> to vector<128xf32>
    %124 = vector.shape_cast %123 : vector<128xf32> to vector<128x1xf32>
    %125 = vector.broadcast %124 : vector<128x1xf32> to vector<128x128xf32>
    %126 = arith.subf %122, %125 : vector<128x128xf32>
    %127 = math.exp %126 : vector<128x128xf32>
    %cst_35 = arith.constant dense<0.000000e+00> : vector<128xf32>
    %128 = vector.multi_reduction <add>, %127, %cst_35 [1] : vector<128x128xf32> to vector<128xf32>
    %129 = vector.shape_cast %128 : vector<128xf32> to vector<128x1xf32>
    %130 = tpu.reciprocal %129 {approx = true} : vector<128x1xf32> -> vector<128x1xf32>
    %131 = vector.broadcast %130 : vector<128x1xf32> to vector<128x128xf32>
    %132 = arith.mulf %127, %131 : vector<128x128xf32>
    %133 = arith.select %120, %132, %117 : vector<128x128xi1>, vector<128x128xf32>
    %c0_36 = arith.constant 0 : index
    %c0_37 = arith.constant 0 : index
    %134 = vector.load %arg10[%c0_36, %c0_37] : memref<128x128xf32, #tpu.memory_space<vmem>>, vector<128x128xf32>
    tpu.vector_store %arg10[%c0_36, %c0_37], %133 {strides = array<i32>} : memref<128x128xf32, #tpu.memory_space<vmem>>, vector<128x128xf32>,
    return
  }
  func.func @transform_0(%arg0: i32) -> (i32, i32) {
    %c0_i32 = arith.constant 0 : i32
    %c0_i32_0 = arith.constant 0 : i32
    return %arg0, %c0_i32 : i32, i32
  }
  func.func @transform_1(%arg0: i32) -> (i32, i32) {
    %c0_i32 = arith.constant 0 : i32
    %c0_i32_0 = arith.constant 0 : i32
    %c0_i32_1 = arith.constant 0 : i32
    return %c0_i32, %c0_i32_0 : i32, i32
  }
  func.func @transform_2(%arg0: i32) -> (i32, i32) {
    %c0_i32 = arith.constant 0 : i32
    %c0_i32_0 = arith.constant 0 : i32
    %c0_i32_1 = arith.constant 0 : i32
    return %c0_i32, %c0_i32_0 : i32, i32
  }
  func.func @transform_3(%arg0: i32) -> (i32, i32) {
    %c0_i32 = arith.constant 0 : i32
    %c0_i32_0 = arith.constant 0 : i32
    %c0_i32_1 = arith.constant 0 : i32
    return %c0_i32, %c0_i32_0 : i32, i32
  }
  func.func @transform_4(%arg0: i32) -> (i32, i32) {
    %c0_i32 = arith.constant 0 : i32
    %c0_i32_0 = arith.constant 0 : i32
    %c0_i32_1 = arith.constant 0 : i32
    return %c0_i32, %c0_i32_0 : i32, i32
  }
  func.func @transform_5(%arg0: i32) -> (i32, i32) {
    %c0_i32 = arith.constant 0 : i32
    %c0_i32_0 = arith.constant 0 : i32
    %c0_i32_1 = arith.constant 0 : i32
    return %c0_i32, %c0_i32_0 : i32, i32
  }
  func.func @transform_6(%arg0: i32) -> (i32, i32) {
    %c0_i32 = arith.constant 0 : i32
    %c0_i32_0 = arith.constant 0 : i32
    %c0_i32_1 = arith.constant 0 : i32
    return %c0_i32, %c0_i32_0 : i32, i32
  }
  func.func @transform_7(%arg0: i32) -> i32 {
    %c0_i32 = arith.constant 0 : i32
    %c0_i32_0 = arith.constant 0 : i32
    return %c0_i32 : i32
  }
  func.func @transform_8(%arg0: i32) -> (i32, i32) {
    %c0_i32 = arith.constant 0 : i32
    %c0_i32_0 = arith.constant 0 : i32
    %c0_i32_1 = arith.constant 0 : i32
    return %c0_i32, %c0_i32_0 : i32, i32
  }
  func.func @transform_9(%arg0: i32) -> (i32, i32) {
    %c0_i32 = arith.constant 0 : i32
    %c0_i32_0 = arith.constant 0 : i32
    return %arg0, %c0_i32 : i32, i32
  }
}

</mosaic_0001>

<bundles_post_ra>
// kernel: tpu_custom_call.1
= control target key start
LH: loop header
LB: loop body
LE: loop exit
PB: predicated region body
PF: predicated region fallthrough
CT: control target
= control target key end

     0   :  { %14 = vsyncpa [#allocation4], 0  ;;  %s3862_s0 = inlined_call_operand.vmem [shape: bf16[256,32], index: 0, kind: input, shape index: {}]   ;;  %s3863_s1 = inlined_call_operand.vmem [shape: bf16[32,128], index: 1, kind: input, shape index: {}]   ;;  %s3864_s2 = inlined_call_operand.vmem [shape: f32[1,128], index: 2, kind: input, shape index: {}]   ;;  %s3865_s3 = inlined_call_operand.vmem [shape: bf16[128,128], index: 3, kind: input, shape index: {}]   ;;  %s3866_s4 = inlined_call_operand.vmem [shape: f32[1,128], index: 4, kind: input, shape index: {}]   ;;  %s3867_s5 = inlined_call_operand.vmem [shape: bf16[128,4], index: 5, kind: input, shape index: {}]   ;;  %s3868_s6 = inlined_call_operand.vmem [shape: f32[1,4], index: 6, kind: input, shape index: {}]   ;;  %s3869_s7 = inlined_call_operand.vmem [shape: f32[18], index: 7, kind: input, shape index: {}]   ;;  %s3870_s8 = inlined_call_operand.vmem [shape: f32[3,128], index: 8, kind: input, shape index: {}]   ;;  %s3871_s9 = inlined_call_operand.hbm [shape: f32[256,128], index: 9, kind: output, shape index: {}]  }
   0x1   :  { %15 = vsyncpa [#allocation3], 0 }
   0x2   :  { %17 = vsyncpa [#allocation3 + $0x1], 0  ;;  %s2623_s30 = smov 0   ;;  %s2625_s10 = smov 0  }
   0x3   :  { %s2627_s11 = smov 0   ;;  %s2629_s12 = smov 0  }
   0x4 LB: > { %s2644_s13 = sadd.s32 4294967295, %s2565_s12   ;;  %s2157_s14 = sadd.s32 4294967294, %s2565_s12   ;;  %s2565_s12 = sphi %s2629_s12, %s3903_s12   ;;  %s2561_s11 = sphi %s2627_s11, %s3902_s11   ;;  %s2557_s10 = sphi %s2625_s10, %s3901_s10   ;;  %s2553_s30 = sphi %s2623_s30, %s3900_s30  }
   0x5   : > { %s2648_s15 = sadd.s32 1, %s2565_s12   ;;  %s224_s16 = sadd.s32 1, %s2561_s11 }
   0x6   : > { %s221_s17 = ssub.s32 %s2565_s12, %s2648_s15  ;;  %p234_p0 = scmp.ne.s32.totalorder %s2561_s11, %s2557_s10 }
   0x7   : > { %p222_p1 = scmp.eq.s32.totalorder %s221_s17, 0  ;;  %p235_p2 = scmp.eq.s32.totalorder %s2644_s13, 1 }
   0x8   : > { %p240_p3 = scmp.ne.s32.totalorder %s2557_s10, %s2553_s30  ;;  %p241_p4 = scmp.eq.s32.totalorder %s2157_s14, 1 }
   0x9   : > { %s2659_s18 = scalar_select %p222_p1, %s2561_s11, %s224_s16  }
   0xa   : > { %p2661_p5 = por %p235_p2, %p234_p0  ;;  %p2665_p6 = por %p241_p4, %p240_p3 }
   0xb   : > { %p2158_p7 = scmp.ge.s32.totalorder %s2565_s12, 1  ;;  %p248_p8 = scmp.lt.s32.totalorder %s2565_s12, 3 }
   0xc   : > { %p2341_p9 = scmp.eq.s32.totalorder %s2644_s13, 0  ;;  %s278_s23 = sshll.u32 %s3869_s7, 4  ;;  %s279_s23 = int_to_ptr.vmem [resolvable:$true] %s278_s23 }
   0xd   : > { %p249_p10 = pnand %p2158_p7, %p248_p8  ;;  %s2567_s24 = smov [#allocation2]  }
   0xf   : > { %p2333_p11 = pneg %p249_p10  ;;  %303 = sbr.rel (%p249_p10) target bundleno = 1272 (0x4f8), region = 56 }
  0x11   : > { %p2334_p12 = pnand %p2341_p9, %p2333_p11 }
  0x13   : > { %2336 = dma.vmem_to_smem (!%p2334_p12), %s279_s23, 16, %s2567_s24, [#allocation4]  }
  0x14   : > { %2544 = dma.done.wait (%p2341_p9), [#allocation4], 16  }
  0x15   : > { %2546 = vsyncadd (%p2341_p9), [#allocation4], 4294967280 }
  0x16   : > { %310 = sfence }
  0x17   : > { %v2309_v0 = vld [vmem:[%s3863_s1 + $0x8] sm:$0xff]  ;;  %s2164_s27 = sshll.u32 %s2644_s13, 4  ;;  %v2308_v1 = vld [vmem:[%s3863_s1] sm:$0xff]  ;;  %vm425_vm0 = vcmask 261120   ;;  %v2317_v7 = vld [vmem:[%s3865_s3 + $0x38] sm:$0xff]  ;;  %s2288_s23 = sld [smem:[#allocation2 + $0xb]] }
  0x18   : > { %p342_p13 = scmp.lt.s32.totalorder %s2164_s27, 31  ;;  %456 = vmatpush.bf16.msra.mxu0 %v2309_v0  ;;  %591 = vmatpush.bf16.msra.mxu1 %v2317_v7  ;;  %v2316_v8 = vld [vmem:[%s3865_s3 + $0x30] sm:$0xff]  ;;  %v2315_v9 = vld [vmem:[%s3865_s3 + $0x28] sm:$0xff]  ;;  %v2314_v11 = vld [vmem:[%s3865_s3 + $0x20] sm:$0xff]  ;;  %s2280_s24 = sld [smem:[#allocation2 + $0x3]] }
  0x19   : > { %664 = vmatpush.bf16.msra.mxu2 %v2317_v7  ;;  %v2313_v12 = vld [vmem:[%s3865_s3 + $0x18] sm:$0xff]  ;;  %v2312_v14 = vld [vmem:[%s3865_s3 + $0x10] sm:$0xff]  ;;  %v2311_v15 = vld [vmem:[%s3865_s3 + $0x8] sm:$0xff]  ;;  %s2279_s25 = sld [smem:[#allocation2 + $0x2]] }
  0x1a   : > { %s3905_s27 = smov (!%p342_p13, %s2164_s27), 31  ;;  %v2310_v16 = vld [vmem:[%s3865_s3] sm:$0xff]  ;;  %s2289_s28 = sld [smem:[#allocation2 + $0xc]] }
  0x1b   : > { %s2165_s14 = sshll.u32 %s3905_s27, 2  ;;  %v2414_v19 = vld [vmem:[%s3864_s2] ss:$0 sm:$0xff]  ;;  %s2278_s29 = sld [smem:[#allocation2 + $0x1]] }
  0x1c   : > { %457 = vmatpush.bf16.msra.mxu0 %v2308_v1  ;;  %s2685_s21 = scalar_lea.vmem %s3862_s0, %s2165_s14  ;;  %592 = vmatpush.bf16.msra.mxu1 %v2316_v8  ;;  %s870_s14 = sld [smem:[#allocation2]] }
  0x1d   : > { %v2300_v2 = vld [vmem:[%s2685_s21] sm:$0xff]  ;;  %v2301_v3 = vld [vmem:[%s2685_s21 + $0x8] sm:$0xff]  ;;  %v2302_v4 = vld [vmem:[%s2685_s21 + $0x10] sm:$0xff]  ;;  %665 = vmatpush.bf16.msra.mxu2 %v2316_v8  ;;  %s2286_s16 = sld [smem:[#allocation2 + $0x9]] }
  0x1e   : > { %v2303_v5 = vld [vmem:[%s2685_s21 + $0x18] sm:$0xff]  ;;  %v2304_v6 = vld [vmem:[%s2685_s21 + $0x20] sm:$0xff]  ;;  %v2305_v10 = vld [vmem:[%s2685_s21 + $0x28] sm:$0xff]  ;;  %s2287_s17 = sld [smem:[#allocation2 + $0xa]] }
  0x1f   : > { %2206 = vmatmul.msk.bf16.vlgmr.msra.gmra.mxu0 %vm425_vm0, %v2300_v2  ;;  %v2306_v13 = vld [vmem:[%s2685_s21 + $0x30] sm:$0xff]  ;;  %v2307_v17 = vld [vmem:[%s2685_s21 + $0x38] sm:$0xff]  ;;  %s2568_s21 = smov 127   ;;  %s2281_s22 = sld [smem:[#allocation2 + $0x4]] }
  0x20   : > { %593 = vmatpush.bf16.msra.mxu1 %v2315_v9  ;;  %s3064_s26 = sld [smem:[#allocation2 + $0xe]] }
  0x21   : > { %666 = vmatpush.bf16.msra.mxu2 %v2315_v9  ;;  %s3070_s27 = sld [smem:[#allocation2 + $0x7]] }
  0x24   : > { %594 = vmatpush.bf16.msra.mxu1 %v2314_v11 }
  0x25   : > { %667 = vmatpush.bf16.msra.mxu2 %v2314_v11 }
  0x28   : > { %595 = vmatpush.bf16.msra.mxu1 %v2313_v12 }
  0x29   : > { %668 = vmatpush.bf16.msra.mxu2 %v2313_v12  ;;  %v2733_v12 = vld [vmem:[%s3866_s4] ss:$0 sm:$0xff] }
  0x2c   : > { %596 = vmatpush.bf16.msra.mxu1 %v2312_v14 }
  0x2d   : > { %669 = vmatpush.bf16.msra.mxu2 %v2312_v14 }
  0x2f   : > { %2207 = vmatmul.msk.bf16.gmra.mxu0 %vm425_vm0, %v2301_v3 }
  0x30   : > { %597 = vmatpush.bf16.msra.mxu1 %v2311_v15 }
  0x31   : > { %670 = vmatpush.bf16.msra.mxu2 %v2311_v15 }
  0x34   : > { %598 = vmatpush.bf16.msra.mxu1 %v2310_v16 }
  0x35   : > { %671 = vmatpush.bf16.msra.mxu2 %v2310_v16 }
  0x3f   : > { %2208 = vmatmul.msk.bf16.gmra.mxu0 %vm425_vm0, %v2302_v4 }
  0x4f   : > { %2209 = vmatmul.msk.bf16.gmra.mxu0 %vm425_vm0, %v2303_v5 }
  0x5f   : > { %2210 = vmatmul.msk.bf16.gmra.mxu0 %vm425_vm0, %v2304_v6 }
  0x6f   : > { %2211 = vmatmul.msk.bf16.gmra.mxu0 %vm425_vm0, %v2305_v10 }
  0x7f   : > { %2212 = vmatmul.msk.bf16.gmra.mxu0 %vm425_vm0, %v2306_v13 }
  0x8f   : > { %2213 = vmatmul.msk.bf16.gmra.mxu0 %vm425_vm0, %v2307_v17 }
  0x9c   : > { %v459_v18 = vpop.f32.mrf.mxu0 }
  0x9d   : > { %v460_v20 = vadd.f32 %v2414_v19, %v459_v18 }
  0x9f   : > { %v499_v23 = vmax.f32 %v460_v20, 0.0 }
  0xa4   : > { %v461_v21 = vpop.f32.mrf.mxu0 }
  0xa5   : > { %v462_v22 = vadd.f32 %v2414_v19, %v461_v21 }
  0xa7   : > { %v500_v24 = vmax.f32 %v462_v22, 0.0 }
  0xa9   : > { %v532_v25 = vpack.c.bf16 %v500_v24, %v499_v23 }
  0xab   : > { %599 = vmatmul.bf16.vlgmr.msra.gmra.mxu1 %v532_v25 }
  0xac   : > { %v464_v26 = vpop.f32.mrf.mxu0 }
  0xad   : > { %v465_v27 = vadd.f32 %v2414_v19, %v464_v26 }
  0xaf   : > { %v501_v29 = vmax.f32 %v465_v27, 0.0 }
  0xb4   : > { %v466_v28 = vpop.f32.mrf.mxu0 }
  0xb5   : > { %v467_v30 = vadd.f32 %v2414_v19, %v466_v28 }
  0xb7   : > { %v502_v31 = vmax.f32 %v467_v30, 0.0 }
  0xb9   : > { %v533_v32 = vpack.c.bf16 %v502_v31, %v501_v29 }
  0xbb   : > { %604 = vmatmul.bf16.gmra.mxu1 %v533_v32 }
  0xbc   : > { %v469_v33 = vpop.f32.mrf.mxu0 }
  0xbd   : > { %v470_v34 = vadd.f32 %v2414_v19, %v469_v33 }
  0xbf   : > { %v503_v36 = vmax.f32 %v470_v34, 0.0 }
  0xc4   : > { %v471_v35 = vpop.f32.mrf.mxu0 }
  0xc5   : > { %v472_v37 = vadd.f32 %v2414_v19, %v471_v35 }
  0xc7   : > { %v504_v38 = vmax.f32 %v472_v37, 0.0 }
  0xc9   : > { %v534_v39 = vpack.c.bf16 %v504_v38, %v503_v36 }
  0xcb   : > { %609 = vmatmul.bf16.gmra.mxu1 %v534_v39 }
  0xcc   : > { %v474_v40 = vpop.f32.mrf.mxu0 }
  0xcd   : > { %v475_v41 = vadd.f32 %v2414_v19, %v474_v40 }
  0xcf   : > { %v505_v43 = vmax.f32 %v475_v41, 0.0 }
  0xd4   : > { %v476_v42 = vpop.f32.mrf.mxu0 }
  0xd5   : > { %v477_v44 = vadd.f32 %v2414_v19, %v476_v42 }
  0xd7   : > { %v506_v45 = vmax.f32 %v477_v44, 0.0 }
  0xd9   : > { %v535_v46 = vpack.c.bf16 %v506_v45, %v505_v43 }
  0xdb   : > { %614 = vmatmul.bf16.gmra.mxu1 %v535_v46 }
  0xdc   : > { %v479_v47 = vpop.f32.mrf.mxu0 }
  0xdd   : > { %v480_v48 = vadd.f32 %v2414_v19, %v479_v47 }
  0xdf   : > { %v507_v50 = vmax.f32 %v480_v48, 0.0 }
  0xe4   : > { %v481_v49 = vpop.f32.mrf.mxu0 }
  0xe5   : > { %v482_v51 = vadd.f32 %v2414_v19, %v481_v49 }
  0xe7   : > { %v508_v52 = vmax.f32 %v482_v51, 0.0 }
  0xe9   : > { %v536_v53 = vpack.c.bf16 %v508_v52, %v507_v50 }
  0xeb   : > { %619 = vmatmul.bf16.gmra.mxu1 %v536_v53  ;;  %v2325_v53 = vld [vmem:[%s3867_s5 + $0x38] sm:$0xff] }
  0xec   : > { %v484_v54 = vpop.f32.mrf.mxu0  ;;  %805 = vmatpush.bf16.msra.mxu3 %v2325_v53 }
  0xed   : > { %v485_v55 = vadd.f32 %v2414_v19, %v484_v54 }
  0xef   : > { %v509_v57 = vmax.f32 %v485_v55, 0.0  ;;  %v2324_v55 = vld [vmem:[%s3867_s5 + $0x30] sm:$0xff] }
  0xf0   : > { %806 = vmatpush.bf16.msra.mxu3 %v2324_v55 }
  0xf4   : > { %v486_v56 = vpop.f32.mrf.mxu0 }
  0xf5   : > { %v487_v58 = vadd.f32 %v2414_v19, %v486_v56 }
  0xf7   : > { %v510_v59 = vmax.f32 %v487_v58, 0.0 }
  0xf9   : > { %v537_v60 = vpack.c.bf16 %v510_v59, %v509_v57  ;;  %v2323_v57 = vld [vmem:[%s3867_s5 + $0x28] sm:$0xff]  ;;  %v2322_v59 = vld [vmem:[%s3867_s5 + $0x20] sm:$0xff] }
  0xfa   : > { %807 = vmatpush.bf16.msra.mxu3 %v2323_v57 }
  0xfb   : > { %624 = vmatmul.bf16.gmra.mxu1 %v537_v60 }
  0xfc   : > { %v489_v61 = vpop.f32.mrf.mxu0 }
  0xfd   : > { %v490_v62 = vadd.f32 %v2414_v19, %v489_v61 }
  0xfe   : > { %808 = vmatpush.bf16.msra.mxu3 %v2322_v59 }
  0xff   : > { %v511_v0 = vmax.f32 %v490_v62, 0.0 }
 0x104   : > { %v491_v63 = vpop.f32.mrf.mxu0 }
 0x105   : > { %v492_v1 = vadd.f32 %v2414_v19, %v491_v63 }
 0x107   : > { %v512_v2 = vmax.f32 %v492_v1, 0.0 }
 0x109   : > { %v538_v3 = vpack.c.bf16 %v512_v2, %v511_v0  ;;  %v2321_v2 = vld [vmem:[%s3867_s5 + $0x18] sm:$0xff] }
 0x10a   : > { %809 = vmatpush.bf16.msra.mxu3 %v2321_v2 }
 0x10b   : > { %629 = vmatmul.bf16.gmra.mxu1 %v538_v3  ;;  %v2320_v3 = vld [vmem:[%s3867_s5 + $0x10] sm:$0xff] }
 0x10c   : > { %v494_v4 = vpop.f32.mrf.mxu0 }
 0x10d   : > { %v495_v5 = vadd.f32 %v2414_v19, %v494_v4 }
 0x10e   : > { %810 = vmatpush.bf16.msra.mxu3 %v2320_v3 }
 0x10f   : > { %v513_v7 = vmax.f32 %v495_v5, 0.0 }
 0x114   : > { %v496_v6 = vpop.f32.mrf.mxu0 }
 0x115   : > { %v497_v8 = vadd.f32 %v2414_v19, %v496_v6  ;;  %v2319_v6 = vld [vmem:[%s3867_s5 + $0x8] sm:$0xff] }
 0x116   : > { %811 = vmatpush.bf16.msra.mxu3 %v2319_v6 }
 0x117   : > { %v514_v9 = vmax.f32 %v497_v8, 0.0 }
 0x119   : > { %v539_v10 = vpack.c.bf16 %v514_v9, %v513_v7 }
 0x11b   : > { %634 = vmatmul.bf16.gmra.mxu1 %v539_v10  ;;  %v2318_v10 = vld [vmem:[%s3867_s5] sm:$0xff] }
 0x11c   : > { %812 = vmatpush.bf16.msra.mxu3 %v2318_v10  ;;  %v2801_v10 = vstv %s2279_s25  ;;  %s3057_s25 = sld [smem:[#allocation2 + $0x6]] }
 0x128   : > { %v600_v11 = vpop.f32.mrf.mxu1 }
 0x129   : > { %v601_v13 = vadd.f32 %v2733_v12, %v600_v11 }
 0x12b   : > { %v640_v16 = vmax.f32 %v601_v13, 0.0 }
 0x130   : > { %v602_v14 = vpop.f32.mrf.mxu1 }
 0x131   : > { %v603_v15 = vadd.f32 %v2733_v12, %v602_v14 }
 0x133   : > { %v641_v17 = vmax.f32 %v603_v15, 0.0 }
 0x135   : > { %v656_v18 = vpack.c.bf16 %v641_v17, %v640_v16 }
 0x137   : > { %672 = vmatmul.bf16.vlgmr.msra.gmra.mxu2 %v656_v18 }
 0x138   : > { %v605_v20 = vpop.f32.mrf.mxu1 }
 0x139   : > { %v606_v19 = vadd.f32 %v2733_v12, %v605_v20 }
 0x13b   : > { %v642_v22 = vmax.f32 %v606_v19, 0.0 }
 0x140   : > { %v607_v21 = vpop.f32.mrf.mxu1 }
 0x141   : > { %v608_v23 = vadd.f32 %v2733_v12, %v607_v21 }
 0x143   : > { %v643_v24 = vmax.f32 %v608_v23, 0.0 }
 0x145   : > { %v657_v25 = vpack.c.bf16 %v643_v24, %v642_v22 }
 0x147   : > { %677 = vmatmul.bf16.gmra.mxu2 %v657_v25 }
 0x148   : > { %v610_v26 = vpop.f32.mrf.mxu1 }
 0x149   : > { %v611_v27 = vadd.f32 %v2733_v12, %v610_v26 }
 0x14b   : > { %v644_v29 = vmax.f32 %v611_v27, 0.0 }
 0x150   : > { %v612_v28 = vpop.f32.mrf.mxu1 }
 0x151   : > { %v613_v30 = vadd.f32 %v2733_v12, %v612_v28 }
 0x153   : > { %v645_v31 = vmax.f32 %v613_v30, 0.0 }
 0x155   : > { %v658_v32 = vpack.c.bf16 %v645_v31, %v644_v29 }
 0x157   : > { %682 = vmatmul.bf16.gmra.mxu2 %v658_v32 }
 0x158   : > { %v615_v33 = vpop.f32.mrf.mxu1 }
 0x159   : > { %v616_v34 = vadd.f32 %v2733_v12, %v615_v33 }
 0x15b   : > { %v646_v36 = vmax.f32 %v616_v34, 0.0 }
 0x160   : > { %v617_v35 = vpop.f32.mrf.mxu1 }
 0x161   : > { %v618_v37 = vadd.f32 %v2733_v12, %v617_v35 }
 0x163   : > { %v647_v38 = vmax.f32 %v618_v37, 0.0 }
 0x165   : > { %v659_v39 = vpack.c.bf16 %v647_v38, %v646_v36 }
 0x167   : > { %687 = vmatmul.bf16.gmra.mxu2 %v659_v39 }
 0x168   : > { %v620_v40 = vpop.f32.mrf.mxu1 }
 0x169   : > { %v621_v41 = vadd.f32 %v2733_v12, %v620_v40 }
 0x16b   : > { %v648_v43 = vmax.f32 %v621_v41, 0.0 }
 0x170   : > { %v622_v42 = vpop.f32.mrf.mxu1 }
 0x171   : > { %v623_v44 = vadd.f32 %v2733_v12, %v622_v42 }
 0x173   : > { %v649_v45 = vmax.f32 %v623_v44, 0.0 }
 0x175   : > { %v660_v46 = vpack.c.bf16 %v649_v45, %v648_v43 }
 0x177   : > { %692 = vmatmul.bf16.gmra.mxu2 %v660_v46 }
 0x178   : > { %v625_v47 = vpop.f32.mrf.mxu1 }
 0x179   : > { %v626_v48 = vadd.f32 %v2733_v12, %v625_v47 }
 0x17b   : > { %v650_v50 = vmax.f32 %v626_v48, 0.0 }
 0x180   : > { %v627_v49 = vpop.f32.mrf.mxu1 }
 0x181   : > { %v628_v51 = vadd.f32 %v2733_v12, %v627_v49 }
 0x183   : > { %v651_v52 = vmax.f32 %v628_v51, 0.0 }
 0x185   : > { %v661_v54 = vpack.c.bf16 %v651_v52, %v650_v50 }
 0x187   : > { %697 = vmatmul.bf16.gmra.mxu2 %v661_v54 }
 0x188   : > { %v630_v56 = vpop.f32.mrf.mxu1 }
 0x189   : > { %v631_v58 = vadd.f32 %v2733_v12, %v630_v56 }
 0x18b   : > { %v652_v61 = vmax.f32 %v631_v58, 0.0 }
 0x190   : > { %v632_v60 = vpop.f32.mrf.mxu1 }
 0x191   : > { %v633_v62 = vadd.f32 %v2733_v12, %v632_v60 }
 0x193   : > { %v653_v63 = vmax.f32 %v633_v62, 0.0 }
 0x195   : > { %v662_v0 = vpack.c.bf16 %v653_v63, %v652_v61 }
 0x197   : > { %702 = vmatmul.bf16.gmra.mxu2 %v662_v0 }
 0x198   : > { %v635_v1 = vpop.f32.mrf.mxu1 }
 0x199   : > { %v636_v4 = vadd.f32 %v2733_v12, %v635_v1 }
 0x19b   : > { %v654_v7 = vmax.f32 %v636_v4, 0.0 }
 0x1a0   : > { %v637_v5 = vpop.f32.mrf.mxu1 }
 0x1a1   : > { %v638_v8 = vadd.f32 %v2733_v12, %v637_v5  ;;  %v2794_v5 = vld [vmem:[%s3868_s6] ss:$0 sm:$0xff] }
 0x1a3   : > { %v655_v9 = vmax.f32 %v638_v8, 0.0  ;;  %v2797_v8 = vstv %s2288_s23  ;;  %s3026_s23 = sld [smem:[#allocation2 + $0x5]] }
 0x1a5   : > { %v663_v11 = vpack.c.bf16 %v655_v9, %v654_v7  ;;  %v2799_v9 = vstv %s2280_s24  ;;  %s3045_s24 = sld [smem:[#allocation2 + $0xd]] }
 0x1a7   : > { %707 = vmatmul.bf16.gmra.mxu2 %v663_v11 }
 0x1ba   : > { %v673_v13 = vpop.f32.mrf.mxu2 }
 0x1bb   : > { %v674_v14 = vadd.f32 %v2733_v12, %v673_v13 }
 0x1bd   : > { %v713_v17 = vmax.f32 %v674_v14, 0.0 }
 0x1c2   : > { %v675_v15 = vpop.f32.mrf.mxu2 }
 0x1c3   : > { %v676_v16 = vadd.f32 %v2733_v12, %v675_v15 }
 0x1c5   : > { %v714_v18 = vmax.f32 %v676_v16, 0.0 }
 0x1c7   : > { %v729_v20 = vpack.c.bf16 %v714_v18, %v713_v17  ;;  %v2817_v18 = vstv %s2289_s28  ;;  %s3105_s28 = sld [smem:[#allocation2 + $0xf]] }
 0x1c9   : > { %813 = vmatmul.bf16.vlgmr.msra.gmra.mxu3 %v729_v20 }
 0x1ca   : > { %v678_v19 = vpop.f32.mrf.mxu2 }
 0x1cb   : > { %v679_v21 = vadd.f32 %v2733_v12, %v678_v19 }
 0x1cd   : > { %v715_v24 = vmax.f32 %v679_v21, 0.0 }
 0x1d2   : > { %v680_v22 = vpop.f32.mrf.mxu2 }
 0x1d3   : > { %v681_v23 = vadd.f32 %v2733_v12, %v680_v22 }
 0x1d5   : > { %v716_v25 = vmax.f32 %v681_v23, 0.0 }
 0x1d7   : > { %v730_v26 = vpack.c.bf16 %v716_v25, %v715_v24 }
 0x1d9   : > { %818 = vmatmul.bf16.gmra.mxu3 %v730_v26 }
 0x1da   : > { %v683_v27 = vpop.f32.mrf.mxu2 }
 0x1db   : > { %v684_v28 = vadd.f32 %v2733_v12, %v683_v27 }
 0x1dd   : > { %v717_v31 = vmax.f32 %v684_v28, 0.0 }
 0x1e2   : > { %v685_v29 = vpop.f32.mrf.mxu2 }
 0x1e3   : > { %v686_v30 = vadd.f32 %v2733_v12, %v685_v29 }
 0x1e5   : > { %v718_v32 = vmax.f32 %v686_v30, 0.0 }
 0x1e7   : > { %v731_v33 = vpack.c.bf16 %v718_v32, %v717_v31 }
 0x1e9   : > { %823 = vmatmul.bf16.gmra.mxu3 %v731_v33 }
 0x1ea   : > { %v688_v34 = vpop.f32.mrf.mxu2 }
 0x1eb   : > { %v689_v35 = vadd.f32 %v2733_v12, %v688_v34 }
 0x1ed   : > { %v719_v38 = vmax.f32 %v689_v35, 0.0 }
 0x1f2   : > { %v690_v36 = vpop.f32.mrf.mxu2 }
 0x1f3   : > { %v691_v37 = vadd.f32 %v2733_v12, %v690_v36 }
 0x1f5   : > { %v720_v39 = vmax.f32 %v691_v37, 0.0 }
 0x1f7   : > { %v732_v40 = vpack.c.bf16 %v720_v39, %v719_v38 }
 0x1f9   : > { %828 = vmatmul.bf16.gmra.mxu3 %v732_v40 }
 0x1fa   : > { %v693_v41 = vpop.f32.mrf.mxu2 }
 0x1fb   : > { %v694_v42 = vadd.f32 %v2733_v12, %v693_v41 }
 0x1fd   : > { %v721_v44 = vmax.f32 %v694_v42, 0.0 }
 0x202   : > { %v695_v43 = vpop.f32.mrf.mxu2 }
 0x203   : > { %v696_v45 = vadd.f32 %v2733_v12, %v695_v43 }
 0x205   : > { %v722_v46 = vmax.f32 %v696_v45, 0.0 }
 0x207   : > { %v733_v47 = vpack.c.bf16 %v722_v46, %v721_v44 }
 0x209   : > { %833 = vmatmul.bf16.gmra.mxu3 %v733_v47 }
 0x20a   : > { %v698_v48 = vpop.f32.mrf.mxu2 }
 0x20b   : > { %v699_v49 = vadd.f32 %v2733_v12, %v698_v48 }
 0x20d   : > { %v723_v51 = vmax.f32 %v699_v49, 0.0 }
 0x212   : > { %v700_v50 = vpop.f32.mrf.mxu2 }
 0x213   : > { %v701_v52 = vadd.f32 %v2733_v12, %v700_v50 }
 0x215   : > { %v724_v53 = vmax.f32 %v701_v52, 0.0 }
 0x217   : > { %v734_v54 = vpack.c.bf16 %v724_v53, %v723_v51 }
 0x219   : > { %838 = vmatmul.bf16.gmra.mxu3 %v734_v54 }
 0x21a   : > { %v703_v55 = vpop.f32.mrf.mxu2 }
 0x21b   : > { %v704_v56 = vadd.f32 %v2733_v12, %v703_v55 }
 0x21d   : > { %v725_v58 = vmax.f32 %v704_v56, 0.0 }
 0x222   : > { %v705_v57 = vpop.f32.mrf.mxu2 }
 0x223   : > { %v706_v59 = vadd.f32 %v2733_v12, %v705_v57 }
 0x225   : > { %v726_v60 = vmax.f32 %v706_v59, 0.0 }
 0x227   : > { %v735_v61 = vpack.c.bf16 %v726_v60, %v725_v58 }
 0x229   : > { %843 = vmatmul.bf16.gmra.mxu3 %v735_v61 }
 0x22a   : > { %v708_v62 = vpop.f32.mrf.mxu2 }
 0x22b   : > { %v709_v63 = vadd.f32 %v2733_v12, %v708_v62 }
 0x22d   : > { %v727_v1 = vmax.f32 %v709_v63, 0.0 }
 0x232   : > { %v710_v0 = vpop.f32.mrf.mxu2 }
 0x233   : > { %v711_v2 = vadd.f32 %v2733_v12, %v710_v0 }
 0x235   : > { %v728_v3 = vmax.f32 %v711_v2, 0.0 }
 0x237   : > { %v736_v4 = vpack.c.bf16 %v728_v3, %v727_v1 }
 0x239   : > { %848 = vmatmul.bf16.gmra.mxu3 %v736_v4 }
 0x24c   : > { %v814_v6 = vpop.f32.mrf.mxu3 }
 0x24d   : > { %v815_v7 = vadd.f32 %v2794_v5, %v814_v6 }
 0x24f   : > { %v2803_v12 = vmax.f32 %v815_v7, 0.0 }
 0x251   : > { %v1200_v11 = vmul.f32 %v2797_v8, %v2803_v12  ;;  %v1053_v13 = vmul.f32 %v2799_v9, %v2803_v12  ;;  %v906_v14 = vmul.f32 %v2801_v10, %v2803_v12  ;;  %v1347_v21 = vmul.f32 %v2817_v18, %v2803_v12 }
 0x253   : > { %1232 = vrot.lane.b32.xlu2 %v1200_v11, %s2568_s21  ;;  %1085 = vrot.lane.b32.xlu1 %v1053_v13, %s2568_s21 }
 0x254   : > { %938 = vrot.lane.b32.xlu0 %v906_v14, %s2568_s21  ;;  %v816_v15 = vpop.f32.mrf.mxu3 }
 0x255   : > { %v817_v16 = vadd.f32 %v2794_v5, %v816_v15 }
 0x257   : > { %v2815_v17 = vmax.f32 %v817_v16, 0.0 }
 0x259   : > { %v1054_v20 = vmul.f32 %v2799_v9, %v2815_v17  ;;  %v1348_v19 = vmul.f32 %v2817_v18, %v2815_v17  ;;  %v907_v27 = vmul.f32 %v2801_v10, %v2815_v17  ;;  %v1201_v33 = vmul.f32 %v2797_v8, %v2815_v17 }
 0x25b   : > { %1087 = vrot.lane.b32.xlu2 %v1054_v20, %s2568_s21  ;;  %1381 = vrot.lane.b32.xlu1 %v1348_v19, %s2568_s21 }
 0x25c   : > { %1379 = vrot.lane.b32.xlu0 %v1347_v21, %s2568_s21  ;;  %v819_v22 = vpop.f32.mrf.mxu3 }
 0x25d   : > { %v820_v23 = vadd.f32 %v2794_v5, %v819_v22 }
 0x25f   : > { %v2829_v24 = vmax.f32 %v820_v23, 0.0 }
 0x261   : > { %v1349_v25 = vmul.f32 %v2817_v18, %v2829_v24  ;;  %v908_v26 = vmul.f32 %v2801_v10, %v2829_v24  ;;  %v1202_v32 = vmul.f32 %v2797_v8, %v2829_v24  ;;  %v1055_v39 = vmul.f32 %v2799_v9, %v2829_v24 }
 0x263   : > { %1383 = vrot.lane.b32.xlu2 %v1349_v25, %s2568_s21  ;;  %942 = vrot.lane.b32.xlu1 %v908_v26, %s2568_s21 }
 0x264   : > { %940 = vrot.lane.b32.xlu0 %v907_v27, %s2568_s21  ;;  %v821_v28 = vpop.f32.mrf.mxu3 }
 0x265   : > { %v822_v29 = vadd.f32 %v2794_v5, %v821_v28 }
 0x267   : > { %v2841_v30 = vmax.f32 %v822_v29, 0.0 }
 0x269   : > { %v1203_v31 = vmul.f32 %v2797_v8, %v2841_v30  ;;  %v909_v38 = vmul.f32 %v2801_v10, %v2841_v30  ;;  %v1056_v43 = vmul.f32 %v2799_v9, %v2841_v30  ;;  %v1350_v44 = vmul.f32 %v2817_v18, %v2841_v30 }
 0x26b   : > { %1238 = vrot.lane.b32.xlu2 %v1203_v31, %s2568_s21  ;;  %1236 = vrot.lane.b32.xlu1 %v1202_v32, %s2568_s21 }
 0x26c   : > { %1234 = vrot.lane.b32.xlu0 %v1201_v33, %s2568_s21  ;;  %v824_v34 = vpop.f32.mrf.mxu3 }
 0x26d   : > { %v825_v35 = vadd.f32 %v2794_v5, %v824_v34 }
 0x26f   : > { %v2853_v36 = vmax.f32 %v825_v35, 0.0 }
 0x271   : > { %v910_v37 = vmul.f32 %v2801_v10, %v2853_v36  ;;  %v1057_v42 = vmul.f32 %v2799_v9, %v2853_v36  ;;  %v1351_v47 = vmul.f32 %v2817_v18, %v2853_v36  ;;  %v1204_v49 = vmul.f32 %v2797_v8, %v2853_v36 }
 0x273   : > { %946 = vrot.lane.b32.xlu2 %v910_v37, %s2568_s21  ;;  %944 = vrot.lane.b32.xlu1 %v909_v38, %s2568_s21 }
 0x274   : > { %1089 = vrot.lane.b32.xlu0 %v1055_v39, %s2568_s21  ;;  %v826_v40 = vpop.f32.mrf.mxu3 }
 0x275   : > { %v827_v41 = vadd.f32 %v2794_v5, %v826_v40 }
 0x277   : > { %v2874_v45 = vmax.f32 %v827_v41, 0.0 }
 0x279   : > { %v911_v46 = vmul.f32 %v2801_v10, %v2874_v45  ;;  %v1352_v51 = vmul.f32 %v2817_v18, %v2874_v45  ;;  %v1205_v52 = vmul.f32 %v2797_v8, %v2874_v45  ;;  %v1058_v53 = vmul.f32 %v2799_v9, %v2874_v45 }
 0x27b   : > { %1093 = vrot.lane.b32.xlu2 %v1057_v42, %s2568_s21  ;;  %1091 = vrot.lane.b32.xlu1 %v1056_v43, %s2568_s21 }
 0x27c   : > { %1385 = vrot.lane.b32.xlu0 %v1350_v44, %s2568_s21  ;;  %v829_v48 = vpop.f32.mrf.mxu3 }
 0x27d   : > { %v830_v50 = vadd.f32 %v2794_v5, %v829_v48 }
 0x27f   : > { %v2895_v55 = vmax.f32 %v830_v50, 0.0 }
 0x281   : > { %v1206_v57 = vmul.f32 %v2797_v8, %v2895_v55  ;;  %v1059_v58 = vmul.f32 %v2799_v9, %v2895_v55  ;;  %v912_v59 = vmul.f32 %v2801_v10, %v2895_v55  ;;  %v1353_v1 = vmul.f32 %v2817_v18, %v2895_v55 }
 0x283   : > { %948 = vrot.lane.b32.xlu2 %v911_v46, %s2568_s21  ;;  %1387 = vrot.lane.b32.xlu1 %v1351_v47, %s2568_s21 }
 0x284   : > { %1240 = vrot.lane.b32.xlu0 %v1204_v49, %s2568_s21  ;;  %v831_v54 = vpop.f32.mrf.mxu3 }
 0x285   : > { %v832_v56 = vadd.f32 %v2794_v5, %v831_v54 }
 0x287   : > { %v2907_v60 = vmax.f32 %v832_v56, 0.0 }
 0x289   : > { %v1060_v63 = vmul.f32 %v2799_v9, %v2907_v60  ;;  %v913_v0 = vmul.f32 %v2801_v10, %v2907_v60  ;;  %v1354_v4 = vmul.f32 %v2817_v18, %v2907_v60  ;;  %v1207_v7 = vmul.f32 %v2797_v8, %v2907_v60 }
 0x28b   : > { %1389 = vrot.lane.b32.xlu2 %v1352_v51, %s2568_s21  ;;  %1242 = vrot.lane.b32.xlu1 %v1205_v52, %s2568_s21 }
 0x28c   : > { %1095 = vrot.lane.b32.xlu0 %v1058_v53, %s2568_s21  ;;  %v834_v61 = vpop.f32.mrf.mxu3 }
 0x28d   : > { %v835_v62 = vadd.f32 %v2794_v5, %v834_v61 }
 0x28f   : > { %v2919_v2 = vmax.f32 %v835_v62, 0.0 }
 0x291   : > { %v914_v3 = vmul.f32 %v2801_v10, %v2919_v2  ;;  %v1355_v13 = vmul.f32 %v2817_v18, %v2919_v2  ;;  %v1208_v14 = vmul.f32 %v2797_v8, %v2919_v2  ;;  %v1061_v15 = vmul.f32 %v2799_v9, %v2919_v2 }
 0x293   : > { %1244 = vrot.lane.b32.xlu2 %v1206_v57, %s2568_s21  ;;  %1097 = vrot.lane.b32.xlu1 %v1059_v58, %s2568_s21 }
 0x294   : > { %950 = vrot.lane.b32.xlu0 %v912_v59, %s2568_s21  ;;  %v836_v6 = vpop.f32.mrf.mxu3 }
 0x295   : > { %v837_v11 = vadd.f32 %v2794_v5, %v836_v6 }
 0x297   : > { %v2940_v20 = vmax.f32 %v837_v11, 0.0  ;;  %v3030_v11 = vstv %s870_s14  ;;  %s3124_s14 = sld [smem:[#allocation2 + $0x10]] }
 0x299   : > { %v1209_v22 = vmul.f32 %v2797_v8, %v2940_v20  ;;  %v1062_v23 = vmul.f32 %v2799_v9, %v2940_v20  ;;  %v915_v25 = vmul.f32 %v2801_v10, %v2940_v20  ;;  %v1356_v33 = vmul.f32 %v2817_v18, %v2940_v20 }
 0x29b   : > { %1099 = vrot.lane.b32.xlu2 %v1060_v63, %s2568_s21  ;;  %952 = vrot.lane.b32.xlu1 %v913_v0, %s2568_s21 }
 0x29c   : > { %1391 = vrot.lane.b32.xlu0 %v1353_v1, %s2568_s21  ;;  %v839_v16 = vpop.f32.mrf.mxu3 }
 0x29d   : > { %v840_v21 = vadd.f32 %v2794_v5, %v839_v16 }
 0x29f   : > { %v2954_v26 = vmax.f32 %v840_v21, 0.0 }
 0x2a1   : > { %3888 = vst [vmem:[#allocation8_spill] sm:$0xff] %v2954_v26  ;;  %v1063_v31 = vmul.f32 %v2799_v9, %v2954_v26  ;;  %v916_v32 = vmul.f32 %v2801_v10, %v2954_v26  ;;  %v1357_v38 = vmul.f32 %v2817_v18, %v2954_v26  ;;  %v1210_v39 = vmul.f32 %v2797_v8, %v2954_v26 }
 0x2a3   : > { %954 = vrot.lane.b32.xlu2 %v914_v3, %s2568_s21  ;;  %1393 = vrot.lane.b32.xlu1 %v1354_v4, %s2568_s21 }
 0x2a4   : > { %1246 = vrot.lane.b32.xlu0 %v1207_v7, %s2568_s21  ;;  %v841_v28 = vpop.f32.mrf.mxu3  ;;  %v3028_v7 = vstv %s2278_s29  ;;  %s3122_s29 = sld [smem:[#allocation2 + $0x8]] }
 0x2a5   : > { %v842_v29 = vadd.f32 %v2794_v5, %v841_v28  ;;  %v3047_v28 = vstv %s2286_s16  ;;  %s3162_s16 = sld [smem:[#allocation2 + $0x11]] }
 0x2a7   : > { %v2968_v34 = vmax.f32 %v842_v29, 0.0  ;;  %v1037_v29 = vmul.f32 %v3028_v7, %v2815_v17 }
 0x2a9   : > { %3889 = vst [vmem:[#allocation9_spill] sm:$0xff] %v2968_v34  ;;  %v917_v37 = vmul.f32 %v2801_v10, %v2968_v34  ;;  %v1358_v46 = vmul.f32 %v2817_v18, %v2968_v34  ;;  %v1211_v47 = vmul.f32 %v2797_v8, %v2968_v34  ;;  %v1064_v48 = vmul.f32 %v2799_v9, %v2968_v34 }
 0x2ab   : > { %1395 = vrot.lane.b32.xlu2 %v1355_v13, %s2568_s21  ;;  %1248 = vrot.lane.b32.xlu1 %v1208_v14, %s2568_s21  ;;  %v3872_v13 = vmov 0  }
 0x2ac   : > { %1101 = vrot.lane.b32.xlu0 %v1061_v15, %s2568_s21  ;;  %v844_v40 = vpop.f32.mrf.mxu3  ;;  %2384 = vset.pattern.permute.xlu2 %v3872_v13 }
 0x2ad   : > { %v2942_v19 = vpop.permute.xlu2 %1232  ;;  %v845_v44 = vadd.f32 %v2794_v5, %v844_v40  ;;  %2382 = vset.pattern.permute.xlu1 %v3872_v13  ;;  %v3059_v40 = vstv %s2281_s22 }
 0x2af   : > { %v2993_v49 = vmax.f32 %v845_v44, 0.0 }
 0x2b1   : > { %3890 = vst [vmem:[#allocation10_spill] sm:$0xff] %v2993_v49  ;;  %v1212_v56 = vmul.f32 %v2797_v8, %v2993_v49  ;;  %v1065_v57 = vmul.f32 %v2799_v9, %v2993_v49  ;;  %v918_v58 = vmul.f32 %v2801_v10, %v2993_v49  ;;  %v1359_v6 = vmul.f32 %v2817_v18, %v2993_v49 }
 0x2b3   : > { %1250 = vrot.lane.b32.xlu2 %v1209_v22, %s2568_s21  ;;  %1103 = vrot.lane.b32.xlu1 %v1062_v23, %s2568_s21  ;;  %v1036_v22 = vmul.f32 %v3028_v7, %v2803_v12  ;;  %v889_v23 = vmul.f32 %v3030_v11, %v2803_v12 }
 0x2b4   : > { %956 = vrot.lane.b32.xlu0 %v915_v25, %s2568_s21  ;;  %v846_v52 = vpop.f32.mrf.mxu3  ;;  %v890_v25 = vmul.f32 %v3030_v11, %v2815_v17 }
 0x2b5   : > { %v2956_v27 = vpop.permute.xlu2 %1087  ;;  %v847_v54 = vadd.f32 %v2794_v5, %v846_v52 }
 0x2b7   : > { %v3011_v59 = vmax.f32 %v847_v54, 0.0 }
 0x2b9   : > { %3891 = vst [vmem:[#allocation11_spill] sm:$0xff] %v3011_v59  ;;  %v1066_v3 = vmul.f32 %v2799_v9, %v3011_v59  ;;  %v919_v4 = vmul.f32 %v2801_v10, %v3011_v59  ;;  %v1213_v44 = vmul.f32 %v2797_v8, %v3011_v59 }
 0x2bb   : > { %1105 = vrot.lane.b32.xlu2 %v1063_v31, %s2568_s21  ;;  %958 = vrot.lane.b32.xlu1 %v916_v32, %s2568_s21  ;;  %v1360_v31 = vmul.f32 %v2817_v18, %v3011_v59  ;;  %v3177_v59 = vstv %s3122_s29  ;;  %s2326_s29 = sshll.u32 %s2644_s13, 7 }
 0x2bc   : > { %1397 = vrot.lane.b32.xlu0 %v1356_v33, %s2568_s21  ;;  %v849_v0 = vpop.f32.mrf.mxu3 }
 0x2bd   : > { %v2970_v35 = vpop.permute.xlu2 %1383  ;;  %v850_v1 = vadd.f32 %v2794_v5, %v849_v0 }
 0x2bf   : > { %v3034_v14 = vmax.f32 %v850_v1, 0.0  ;;  %v3092_v1 = vmul.f32 %v3030_v11, %v2829_v24 }
 0x2c1   : > { %3892 = vst [vmem:[#allocation12_spill] sm:$0xff] %v3034_v14 }
 0x2c3   : > { %960 = vrot.lane.b32.xlu2 %v917_v37, %s2568_s21  ;;  %1399 = vrot.lane.b32.xlu1 %v1357_v38, %s2568_s21  ;;  %v920_v38 = vmul.f32 %v2801_v10, %v3034_v14 }
 0x2c4   : > { %1252 = vrot.lane.b32.xlu0 %v1210_v39, %s2568_s21  ;;  %v3055_v39 = vstv %s2287_s17 }
 0x2c5   : > { %v2981_v41 = vpop.permute.xlu2 %1238  ;;  %v1086_v42 = vpop.permute.xlu1 %1085  ;;  %v1330_v52 = vmul.f32 %v3055_v39, %v2803_v12  ;;  %v1331_v0 = vmul.f32 %v3055_v39, %v2815_v17 }
 0x2c6   : > { %v939_v43 = vpop.permute.xlu0 %938  ;;  %v1133_v32 = vadd.f32 %v1086_v42, %v1036_v22  ;;  %v1183_v42 = vmul.f32 %v3047_v28, %v2803_v12  ;;  %v1184_v12 = vmul.f32 %v3047_v28, %v2815_v17  ;;  %v1185_v22 = vmul.f32 %v3047_v28, %v2829_v24 }
 0x2c7   : > { %v986_v33 = vadd.f32 %v939_v43, %v889_v23  ;;  %v3073_v43 = vstv %s3026_s23  ;;  %v1038_v23 = vmul.f32 %v3028_v7, %v2829_v24 }
 0x2cb   : > { %1401 = vrot.lane.b32.xlu2 %v1358_v46, %s2568_s21  ;;  %1254 = vrot.lane.b32.xlu1 %v1211_v47, %s2568_s21  ;;  %v1134_v46 = vadd.f32 %v2956_v27, %v1037_v29  ;;  %v851_v47 = vpop.f32.mrf.mxu3  ;;  %v1003_v27 = vadd.f32 %v3059_v40, %v986_v33 }
 0x2cc   : > { %1107 = vrot.lane.b32.xlu0 %v1064_v48, %s2568_s21  ;;  %v1150_v48 = vadd.f32 %v3073_v43, %v1133_v32  ;;  %v852_v17 = vadd.f32 %v2794_v5, %v851_v47  ;;  %v1067_v5 = vmul.f32 %v2799_v9, %v3034_v14  ;;  %v3127_v47 = vstv %s3064_s26  ;;  %s338_s26 = sand.u32 1, %s2557_s10  }
 0x2cd   : > { %v2995_v50 = vpop.permute.xlu2 %946  ;;  %v2997_v51 = vpop.permute.xlu1 %1381  ;;  %v1019_v33 = vmax.f32 %v1003_v27, 0.0  ;;  %s2068_s13 = scalar_lea.sflag [#allocation3], %s338_s26 }
 0x2ce   : > { %v2999_v53 = vpop.permute.xlu0 %1379  ;;  %v1166_v32 = vmax.f32 %v1150_v48, 0.0 }
 0x2cf   : > { %v1427_v29 = vadd.f32 %v2999_v53, %v1330_v52  ;;  %v892_v52 = vmul.f32 %v3030_v11, %v2841_v30 }
 0x2d3   : > { %1256 = vrot.lane.b32.xlu2 %v1212_v56, %s2568_s21  ;;  %1109 = vrot.lane.b32.xlu1 %v1065_v57, %s2568_s21 }
 0x2d4   : > { %962 = vrot.lane.b32.xlu0 %v918_v58, %s2568_s21  ;;  %v3874_v58 = vmov 2  }
 0x2d5   : > { %v3013_v61 = vpop.permute.xlu2 %1093  ;;  %v3015_v62 = vpop.permute.xlu1 %942  ;;  %2383 = vset.pattern.permute.xlu0 %v3874_v58 }
 0x2d6   : > { %v941_v63 = vpop.permute.xlu0 %940 }
 0x2d7   : > { %v987_v37 = vadd.f32 %v941_v63, %v890_v25  ;;  %v1332_v63 = vmul.f32 %v3055_v39, %v2829_v24  ;;  %v3108_v25 = vstv %s3045_s24  ;;  %v1280_v24 = vadd.f32 %v2942_v19, %v1183_v42 }
 0x2d8   : > { %v3133_v19 = vstv %s3070_s27  ;;  %v1444_v42 = vadd.f32 %v3127_v47, %v1427_v29  ;;  %v1039_v29 = vmul.f32 %v3028_v7, %v2841_v30  ;;  %s2163_s27 = sshll.u32 %s338_s26, 7 }
 0x2d9   : > { %v1004_v54 = vadd.f32 %v3059_v40, %v987_v37  ;;  %v1429_v48 = vadd.f32 %v2970_v35, %v1332_v63 }
 0x2db   : > { %1111 = vrot.lane.b32.xlu2 %v1066_v3, %s2568_s21  ;;  %964 = vrot.lane.b32.xlu1 %v919_v4, %s2568_s21  ;;  %v1151_v4 = vadd.f32 %v3073_v43, %v1134_v46  ;;  %v1020_v37 = vmax.f32 %v1004_v54, 0.0  ;;  %v1494_v54 = vmul.f32 %v3133_v19, %v1166_v32 }
 0x2dc   : > { %1403 = vrot.lane.b32.xlu0 %v1359_v6, %s2568_s21  ;;  %v3099_v6 = vmul.f32 %v3047_v28, %v2841_v30 }
 0x2dd   : > { %v3036_v15 = vpop.permute.xlu2 %948  ;;  %v1237_v16 = vpop.permute.xlu1 %1236  ;;  %v1167_v53 = vmax.f32 %v1151_v4, 0.0 }
 0x2de   : > { %v1235_v21 = vpop.permute.xlu0 %1234  ;;  %v1282_v46 = vadd.f32 %v1237_v16, %v1185_v22  ;;  %v3135_v16 = vmax.f32 %v852_v17, 0.0  ;;  %v1297_v22 = vadd.f32 %v3108_v25, %v1280_v24  ;;  %v1460_v24 = vmax.f32 %v1444_v42, 0.0 }
 0x2df   : > { %v1281_v27 = vadd.f32 %v1235_v21, %v1184_v12  ;;  %v1428_v21 = vadd.f32 %v2997_v51, %v1331_v0  ;;  %v1495_v51 = vmul.f32 %v3133_v19, %v1167_v53  ;;  %v1446_v0 = vadd.f32 %v3127_v47, %v1429_v48 }
 0x2e0   : > { %v1299_v17 = vadd.f32 %v3108_v25, %v1282_v46  ;;  %v1215_v46 = vmul.f32 %v2797_v8, %v3135_v16  ;;  %v1068_v53 = vmul.f32 %v2799_v9, %v3135_v16  ;;  %v1313_v58 = vmax.f32 %v1297_v22, 0.0 }
 0x2e1   : > { %v3180_v42 = vstv %s3124_s14  ;;  %v1462_v49 = vmax.f32 %v1446_v0, 0.0 }
 0x2e2   : > { %v1577_v9 = vmul.f32 %v3180_v42, %v1460_v24 }
 0x2e3   : > { %966 = vrot.lane.b32.xlu2 %v920_v38, %s2568_s21  ;;  %1405 = vrot.lane.b32.xlu1 %v1360_v31, %s2568_s21  ;;  %v1361_v31 = vmul.f32 %v2817_v18, %v3034_v14  ;;  %v1214_v38 = vmul.f32 %v2797_v8, %v3034_v14  ;;  %v921_v14 = vmul.f32 %v2801_v10, %v3135_v16 }
 0x2e4   : > { %1258 = vrot.lane.b32.xlu0 %v1213_v44, %s2568_s21  ;;  %v3118_v44 = vstv %s3057_s25 }
 0x2e5   : > { %v3081_v56 = vpop.permute.xlu2 %1389  ;;  %v3083_v57 = vpop.permute.xlu1 %944  ;;  %v1477_v35 = vmul.f32 %v3118_v44, %v1019_v33  ;;  %v1478_v63 = vmul.f32 %v3118_v44, %v1020_v37  ;;  %v893_v33 = vmul.f32 %v3030_v11, %v2853_v36  ;;  %v1298_v37 = vadd.f32 %v3108_v25, %v1281_v27 }
 0x2e6   : > { %v1090_v3 = vpop.permute.xlu0 %1089  ;;  %v1315_v27 = vmax.f32 %v1299_v17, 0.0 }
 0x2e7   : > { %v1511_v48 = vadd.f32 %v1495_v51, %v1478_v63  ;;  %v1510_v13 = vadd.f32 %v1494_v54, %v1477_v35  ;;  %v1314_v34 = vmax.f32 %v1298_v37, 0.0  ;;  %v1135_v26 = vadd.f32 %v1090_v3, %v1038_v23 }
 0x2e8   : > { %v990_v8 = vadd.f32 %v2995_v50, %v893_v33  ;;  %v3203_v51 = vstv %s3162_s16 }
 0x2e9   : > { %v1528_v23 = vadd.f32 %v3177_v59, %v1511_v48  ;;  %v1527_v22 = vadd.f32 %v3177_v59, %v1510_v13 }
 0x2ea   : > { %v1007_v13 = vadd.f32 %v3059_v40, %v990_v8 }
 0x2eb   : > { %1407 = vrot.lane.b32.xlu2 %v1361_v31, %s2568_s21  ;;  %1260 = vrot.lane.b32.xlu1 %v1214_v38, %s2568_s21  ;;  %v3153_v31 = vmul.f32 %v3055_v39, %v2841_v30  ;;  %v3165_v38 = vstv %s3105_s28  ;;  %v1040_v30 = vmul.f32 %v3028_v7, %v2853_v36  ;;  %v1544_v37 = vmax.f32 %v1528_v23, 0.0  ;;  %s3750_s28 = scalar_lea.vmem [#allocation5], %s2163_s27 }
 0x2ec   : > { %1113 = vrot.lane.b32.xlu0 %v1067_v5, %s2568_s21  ;;  %v1445_v5 = vadd.f32 %v3127_v47, %v1428_v21  ;;  %v988_v21 = vadd.f32 %v3015_v62, %v3092_v1  ;;  %v1560_v50 = vmul.f32 %v3165_v38, %v1313_v58  ;;  %v1562_v17 = vmul.f32 %v3165_v38, %v1315_v27  ;;  %s2080_s17 = sshll.u32 %s3750_s28, 4  ;;  %s2081_s17 = int_to_ptr.vmem [resolvable:$true] %s2080_s17 }
 0x2ed   : > { %v3145_v12 = vpop.permute.xlu2 %1244  ;;  %v1092_v4 = vpop.permute.xlu1 %1091  ;;  %v1137_v54 = vadd.f32 %v3013_v61, %v1040_v30  ;;  %v989_v61 = vadd.f32 %v3083_v57, %v892_v52  ;;  %v1561_v62 = vmul.f32 %v3165_v38, %v1314_v34  ;;  %v1152_v1 = vadd.f32 %v3073_v43, %v1135_v26 }
 0x2ee   : > { %v3155_v32 = vpop.permute.xlu0 %1385  ;;  %v1136_v35 = vadd.f32 %v1092_v4, %v1039_v29  ;;  %v1461_v10 = vmax.f32 %v1445_v5, 0.0  ;;  %v1579_v29 = vmul.f32 %v3180_v42, %v1462_v49  ;;  %v1593_v33 = vadd.f32 %v1577_v9, %v1560_v50 }
 0x2ef   : > { %v1154_v58 = vadd.f32 %v3073_v43, %v1137_v54  ;;  %v1005_v52 = vadd.f32 %v3059_v40, %v988_v21  ;;  %v1543_v24 = vmax.f32 %v1527_v22, 0.0  ;;  %v1006_v49 = vadd.f32 %v3059_v40, %v989_v61 }
 0x2f0   : > { %v1153_v0 = vadd.f32 %v3073_v43, %v1136_v35  ;;  %v1578_v57 = vmul.f32 %v3180_v42, %v1461_v10  ;;  %v1187_v26 = vmul.f32 %v3047_v28, %v2853_v36  ;;  %v1362_v34 = vmul.f32 %v2817_v18, %v3135_v16 }
 0x2f1   : > { %v1595_v30 = vadd.f32 %v1579_v29, %v1562_v17  ;;  %v1168_v5 = vmax.f32 %v1152_v1, 0.0  ;;  %v1023_v27 = vmax.f32 %v1007_v13, 0.0  ;;  %v1170_v8 = vmax.f32 %v1154_v58, 0.0 }
 0x2f2   : > { %v1594_v48 = vadd.f32 %v1578_v57, %v1561_v62  ;;  %v1169_v9 = vmax.f32 %v1153_v0, 0.0  ;;  %v1021_v54 = vmax.f32 %v1005_v52, 0.0  ;;  %v1022_v22 = vmax.f32 %v1006_v49, 0.0 }
 0x2f3   : > { %1262 = vrot.lane.b32.xlu2 %v1215_v46, %s2568_s21  ;;  %1115 = vrot.lane.b32.xlu1 %v1068_v53, %s2568_s21  ;;  %v1335_v46 = vmul.f32 %v3055_v39, %v2874_v45  ;;  %v1188_v53 = vmul.f32 %v3047_v28, %v2874_v45  ;;  %v1430_v50 = vadd.f32 %v3155_v32, %v3153_v31 }
 0x2f4   : > { %968 = vrot.lane.b32.xlu0 %v921_v14, %s2568_s21  ;;  %v1334_v14 = vmul.f32 %v3055_v39, %v2853_v36  ;;  %v1610_v36 = vadd.f32 %v3203_v51, %v1593_v33  ;;  %v1612_v29 = vadd.f32 %v3203_v51, %v1595_v30  ;;  %v1283_v62 = vadd.f32 %v2981_v41, %v3099_v6 }
 0x2f5   : > { %v3190_v63 = vpop.permute.xlu2 %1099  ;;  %v1388_v3 = vpop.permute.xlu1 %1387  ;;  %v1432_v18 = vadd.f32 %v3081_v56, %v1335_v46  ;;  %v1496_v1 = vmul.f32 %v3133_v19, %v1168_v5  ;;  %v1611_v56 = vadd.f32 %v3203_v51, %v1594_v48  ;;  %v1479_v31 = vmul.f32 %v3118_v44, %v1021_v54 }
 0x2f6   : > { %v1241_v4 = vpop.permute.xlu0 %1240  ;;  %v1431_v35 = vadd.f32 %v1388_v3, %v1334_v14  ;;  %v1481_v3 = vmul.f32 %v3118_v44, %v1023_v27  ;;  %v1498_v14 = vmul.f32 %v3133_v19, %v1170_v8  ;;  %v1626_v0 = vmax.f32 %v1610_v36, 0.0 }
 0x2f7   : > { %v1284_v10 = vadd.f32 %v1241_v4, %v1187_v26  ;;  %v1497_v4 = vmul.f32 %v3133_v19, %v1169_v9  ;;  %v1449_v41 = vadd.f32 %v3127_v47, %v1432_v18  ;;  %v1480_v6 = vmul.f32 %v3118_v44, %v1022_v22 }
 0x2f8   : > { %v1448_v32 = vadd.f32 %v3127_v47, %v1431_v35  ;;  %v1447_v33 = vadd.f32 %v3127_v47, %v1430_v50  ;;  %v1628_v57 = vmax.f32 %v1612_v29, 0.0  ;;  %v1300_v52 = vadd.f32 %v3108_v25, %v1283_v62 }
 0x2f9   : > { %v1301_v58 = vadd.f32 %v3108_v25, %v1284_v10  ;;  %v1627_v49 = vmax.f32 %v1611_v56, 0.0  ;;  %v1512_v26 = vadd.f32 %v1496_v1, %v1479_v31  ;;  %v1042_v30 = vmul.f32 %v3028_v7, %v2895_v55 }
 0x2fa   : > { %v1514_v46 = vadd.f32 %v1498_v14, %v1481_v3  ;;  %v1513_v5 = vadd.f32 %v1497_v4, %v1480_v6  ;;  %v1041_v27 = vmul.f32 %v3028_v7, %v2874_v45  ;;  %v895_v36 = vmul.f32 %v3030_v11, %v2895_v55 }
 0x2fb   : > { %1650 = vperm.xlu2 %2384, %v1544_v37   ;;  %1645 = vperm.xlu1 %2382, %v1543_v24   ;;  %v894_v37 = vmul.f32 %v3030_v11, %v2874_v45  ;;  %v3893_v24 = vmov 2   ;;  %v1317_v48 = vmax.f32 %v1301_v58, 0.0  ;;  %v1465_v54 = vmax.f32 %v1449_v41, 0.0 }
 0x2fc   : > { %1409 = vrot.lane.b32.xlu0 %v1362_v34, %s2568_s21  ;;  %v1463_v18 = vmax.f32 %v1447_v33, 0.0  ;;  %v1043_v35 = vmul.f32 %v3028_v7, %v2907_v60  ;;  %v1316_v22 = vmax.f32 %v1300_v52, 0.0  ;;  %v1529_v29 = vadd.f32 %v3177_v59, %v1512_v26  ;;  %s2079_s21 = scalar_lea.hbm %s3871_s9, %s2326_s29  ;;  %s2519_s29 = scalar_lea.hbm %s3871_s9, 256 }
 0x2fd   : > { %v3222_v21 = vpop.permute.xlu2 %954  ;;  %v1243_v23 = vpop.permute.xlu1 %1242  ;;  %v1531_v1 = vadd.f32 %v3177_v59, %v1514_v46  ;;  %v1530_v56 = vadd.f32 %v3177_v59, %v1513_v5  ;;  %v991_v3 = vadd.f32 %v3036_v15, %v894_v37  ;;  %v1564_v4 = vmul.f32 %v3165_v38, %v1317_v48  ;;  %s2082_s22 = sshll.u32 %s2079_s21, 4  ;;  %s2083_s22 = int_to_ptr.hbm [resolvable:$true] %s2082_s22 }
 0x2fe   : > { %v1285_v17 = vadd.f32 %v1243_v23, %v1188_v53  ;;  %v1096_v61 = vpop.permute.xlu0 %1095  ;;  %v1464_v53 = vmax.f32 %v1448_v32, 0.0  ;;  %v1140_v45 = vadd.f32 %v3190_v63, %v1043_v35  ;;  %v1563_v32 = vmul.f32 %v3165_v38, %v1316_v22  ;;  %s2513_s23 = sshra.s32 %s2083_s22, 4  ;;  %s2514_s23 = int_to_ptr.hbm [resolvable:$true] %s2513_s23 }
 0x2ff   : > { %v1138_v50 = vadd.f32 %v1096_v61, %v1041_v27  ;;  %v1580_v61 = vmul.f32 %v3180_v42, %v1463_v18  ;;  %v896_v15 = vmul.f32 %v3030_v11, %v2907_v60  ;;  %v3894_v6 = vmov 0   ;;  %s2515_s24 = scalar_lea.hbm %s2514_s23, 128  ;;  %p2520_p3 = scmp.lt.s32.totalorder %s2514_s23, %s3871_s9 }
 0x300   : > { %v1302_v13 = vadd.f32 %v3108_v25, %v1285_v17  ;;  %v1581_v14 = vmul.f32 %v3180_v42, %v1464_v53  ;;  %v1157_v41 = vadd.f32 %v3073_v43, %v1140_v45  ;;  %v1547_v33 = vmax.f32 %v1531_v1, 0.0  ;;  %p2516_p0 = scmp.ne.s32.totalorder %s2514_s23, %s2515_s24  ;;  %p2521_p4 = scmp.lt.s32.totalorder %s2519_s29, %s2515_s24 }
 0x301   : > { %v1155_v58 = vadd.f32 %v3073_v43, %v1138_v50  ;;  %v1008_v37 = vadd.f32 %v3059_v40, %v991_v3  ;;  %v1336_v26 = vmul.f32 %v3055_v39, %v2895_v55  ;;  %v1596_v48 = vadd.f32 %v1580_v61, %v1563_v32 }
 0x302   : > { %v1318_v34 = vmax.f32 %v1302_v13, 0.0  ;;  %v1582_v13 = vmul.f32 %v3180_v42, %v1465_v54  ;;  %v1189_v27 = vmul.f32 %v3047_v28, %v2895_v55  ;;  %v1173_v54 = vmax.f32 %v1157_v41, 0.0  ;;  %p2517_p1 = pnand %p2516_p0, %p2661_p5  ;;  %p2522_p7 = por %p2521_p4, %p2520_p3 }
 0x303   : > { %2387 = vset.pattern.permute.xlu2 %v3893_v24  ;;  %2385 = vset.pattern.permute.xlu1 %v3893_v24  ;;  %v1613_v55 = vadd.f32 %v3203_v51, %v1596_v48  ;;  %v1337_v1 = vmul.f32 %v3055_v39, %v2907_v60 }
 0x304   : > { %1743 = vperm.xlu0 %2383, %v1626_v0   ;;  %1753 = vperm.xlu2 %2387, %v1628_v57   ;;  %v1565_v62 = vmul.f32 %v3165_v38, %v1318_v34  ;;  %v1545_v0 = vmax.f32 %v1529_v29, 0.0  ;;  %v1546_v57 = vmax.f32 %v1530_v56, 0.0  ;;  %v1597_v34 = vadd.f32 %v1581_v14, %v1564_v4  ;;  %p2518_p2 = pneg %p2517_p1 }
 0x305   : > { %1748 = vperm.xlu1 %2385, %v1627_v49   ;;  %v3250_v8 = vpop.permute.xlu2 %1395  ;;  %v1098_v9 = vpop.permute.xlu1 %1097  ;;  %v1286_v22 = vadd.f32 %v3145_v12, %v1189_v27  ;;  %v1190_v56 = vmul.f32 %v3047_v28, %v2907_v60  ;;  %v1501_v3 = vmul.f32 %v3133_v19, %v1173_v54 }
 0x306   : > { %v1139_v10 = vadd.f32 %v1098_v9, %v1042_v30  ;;  %v951_v23 = vpop.permute.xlu0 %950  ;;  %v1598_v52 = vadd.f32 %v1582_v13, %v1565_v62  ;;  %v1171_v9 = vmax.f32 %v1155_v58, 0.0  ;;  %v1614_v50 = vadd.f32 %v3203_v51, %v1597_v34  ;;  %p2523_p8 = pnand %p2522_p7, %p2518_p2 }
 0x307   : > { %v992_v17 = vadd.f32 %v951_v23, %v895_v36  ;;  %v1024_v23 = vmax.f32 %v1008_v37, 0.0  ;;  %v1303_v61 = vadd.f32 %v3108_v25, %v1286_v22 }
 0x308   : > { %v1156_v31 = vadd.f32 %v3073_v43, %v1139_v10  ;;  %v1615_v10 = vadd.f32 %v3203_v51, %v1598_v52  ;;  %v1499_v62 = vmul.f32 %v3133_v19, %v1171_v9  ;;  %v1630_v32 = vmax.f32 %v1614_v50, 0.0 }
 0x309   : > { %v1009_v63 = vadd.f32 %v3059_v40, %v992_v17  ;;  %v1482_v13 = vmul.f32 %v3118_v44, %v1024_v23  ;;  %v1044_v50 = vmul.f32 %v3028_v7, %v2919_v2 }
 0x30a   : > { %v1172_v30 = vmax.f32 %v1156_v31, 0.0  ;;  %v1631_v4 = vmax.f32 %v1615_v10, 0.0  ;;  %v1338_v31 = vmul.f32 %v3055_v39, %v2919_v2  ;;  %v1191_v10 = vmul.f32 %v3047_v28, %v2919_v2 }
 0x30b   : > { %v1025_v46 = vmax.f32 %v1009_v63, 0.0 }
 0x30c   : > { %2386 = vset.pattern.permute.xlu0 %v3894_v6  ;;  %2390 = vset.pattern.permute.xlu2 %v3894_v6  ;;  %v1500_v17 = vmul.f32 %v3133_v19, %v1172_v30  ;;  %v1435_v52 = vadd.f32 %v3250_v8, %v1338_v31 }
 0x30d   : > { %1655 = vperm.xlu0 %2386, %v1545_v0   ;;  %2388 = vset.pattern.permute.xlu1 %v3894_v6  ;;  %v953_v49 = vpop.permute.xlu1 %952  ;;  %v3281_v36 = vpop.permute.xlu2 %1250  ;;  %v1483_v29 = vmul.f32 %v3118_v44, %v1025_v46  ;;  %v1629_v0 = vmax.f32 %v1613_v55, 0.0 }
 0x30e   : > { %v993_v5 = vadd.f32 %v953_v49, %v896_v15  ;;  %1665 = vperm.xlu2 %2390, %v1547_v33   ;;  %v1392_v53 = vpop.permute.xlu0 %1391  ;;  %1660 = vperm.xlu1 %2388, %v1546_v57   ;;  %v1515_v57 = vadd.f32 %v1499_v62, %v1482_v13  ;;  %v1452_v54 = vadd.f32 %v3127_v47, %v1435_v52  ;;  %v3895_v52 = vld [vmem:[#allocation8_spill] sm:$0xff] }
 0x30f   : > { %v1433_v35 = vadd.f32 %v1392_v53, %v1336_v26  ;;  %v1516_v41 = vadd.f32 %v1500_v17, %v1483_v29  ;;  %v897_v26 = vmul.f32 %v3030_v11, %v2919_v2 }
 0x310   : > { %v1010_v18 = vadd.f32 %v3059_v40, %v993_v5  ;;  %v1319_v5 = vmax.f32 %v1303_v61, 0.0  ;;  %v1532_v8 = vadd.f32 %v3177_v59, %v1515_v57  ;;  %v898_v57 = vmul.f32 %v3030_v11, %v2940_v20 }
 0x311   : > { %v1450_v14 = vadd.f32 %v3127_v47, %v1433_v35  ;;  %v1533_v48 = vadd.f32 %v3177_v59, %v1516_v41  ;;  %v994_v27 = vadd.f32 %v3222_v21, %v897_v26 }
 0x312   : > { %v1026_v45 = vmax.f32 %v1010_v18, 0.0  ;;  %v1566_v21 = vmul.f32 %v3165_v38, %v1319_v5  ;;  %v1192_v5 = vmul.f32 %v3047_v28, %v2940_v20 }
 0x313   : > { %v1466_v37 = vmax.f32 %v1450_v14, 0.0  ;;  %v1549_v55 = vmax.f32 %v1533_v48, 0.0  ;;  %v1011_v62 = vadd.f32 %v3059_v40, %v994_v27 }
 0x314   : > { %v1484_v12 = vmul.f32 %v3118_v44, %v1026_v45 }
 0x315   : > { %2393 = vset.pattern.permute.xlu0 %v3893_v24  ;;  %v1394_v63 = vpop.permute.xlu1 %1393  ;;  %v1106_v34 = vpop.permute.xlu2 %1105  ;;  %v1583_v18 = vmul.f32 %v3180_v42, %v1466_v37  ;;  %v1027_v61 = vmax.f32 %v1011_v62, 0.0  ;;  %v1046_v37 = vmul.f32 %v3028_v7, %v3895_v52  ;;  %v1339_v62 = vmul.f32 %v3055_v39, %v2940_v20 }
 0x316   : > { %v1434_v58 = vadd.f32 %v1394_v63, %v1337_v1  ;;  %2391 = vset.pattern.permute.xlu2 %v3893_v24  ;;  %1768 = vperm.xlu0 %2393, %v1631_v4   ;;  %v1247_v60 = vpop.permute.xlu0 %1246  ;;  %v1517_v15 = vadd.f32 %v1501_v3, %v1484_v12  ;;  %v1468_v12 = vmax.f32 %v1452_v54, 0.0 }
 0x317   : > { %v1287_v33 = vadd.f32 %v1247_v60, %v1190_v56  ;;  %2389 = vset.pattern.permute.xlu1 %v3893_v24  ;;  %1763 = vperm.xlu2 %2391, %v1630_v32   ;;  %v1548_v56 = vmax.f32 %v1532_v8, 0.0  ;;  %v1599_v2 = vadd.f32 %v1583_v18, %v1566_v21  ;;  %v1143_v27 = vadd.f32 %v1106_v34, %v1046_v37 }
 0x318   : > { %v1451_v49 = vadd.f32 %v3127_v47, %v1434_v58  ;;  %1758 = vperm.xlu1 %2389, %v1629_v0   ;;  %v1534_v46 = vadd.f32 %v3177_v59, %v1517_v15  ;;  %v1585_v58 = vmul.f32 %v3180_v42, %v1468_v12  ;;  %v1045_v0 = vmul.f32 %v3028_v7, %v2940_v20 }
 0x319   : > { %v1304_v30 = vadd.f32 %v3108_v25, %v1287_v33  ;;  %v1616_v15 = vadd.f32 %v3203_v51, %v1599_v2  ;;  %v1289_v18 = vadd.f32 %v3281_v36, %v1192_v5  ;;  %v1160_v34 = vadd.f32 %v3073_v43, %v1143_v27 }
 0x31a   : > { %v1467_v53 = vmax.f32 %v1451_v49, 0.0  ;;  %v1550_v17 = vmax.f32 %v1534_v46, 0.0  ;;  %v1485_v46 = vmul.f32 %v3118_v44, %v1027_v61  ;;  %v899_v21 = vmul.f32 %v3030_v11, %v3895_v52 }
 0x31b   : > { %v1320_v9 = vmax.f32 %v1304_v30, 0.0  ;;  %v1632_v8 = vmax.f32 %v1616_v15, 0.0  ;;  %v1306_v36 = vadd.f32 %v3108_v25, %v1289_v18  ;;  %v1176_v2 = vmax.f32 %v1160_v34, 0.0 }
 0x31c   : > { %v1584_v35 = vmul.f32 %v3180_v42, %v1467_v53 }
 0x31d   : > { %v1567_v23 = vmul.f32 %v3165_v38, %v1320_v9  ;;  %v1249_v22 = vpop.permute.xlu1 %1248  ;;  %v3329_v31 = vpop.permute.xlu2 %960 }
 0x31e   : > { %v1288_v29 = vadd.f32 %v1249_v22, %v1191_v10  ;;  %2396 = vset.pattern.permute.xlu0 %v3894_v6  ;;  %v1102_v45 = vpop.permute.xlu0 %1101 }
 0x31f   : > { %v1141_v1 = vadd.f32 %v1102_v45, %v1044_v50  ;;  %1680 = vperm.xlu0 %2396, %v1550_v17   ;;  %2394 = vset.pattern.permute.xlu2 %v3894_v6  ;;  %v1600_v3 = vadd.f32 %v1584_v35, %v1567_v23 }
 0x320   : > { %v1305_v14 = vadd.f32 %v3108_v25, %v1288_v29  ;;  %2392 = vset.pattern.permute.xlu1 %v3894_v6  ;;  %1675 = vperm.xlu2 %2394, %v1549_v55  }
 0x321   : > { %v1158_v4 = vadd.f32 %v3073_v43, %v1141_v1  ;;  %1670 = vperm.xlu1 %2392, %v1548_v56   ;;  %v1617_v32 = vadd.f32 %v3203_v51, %v1600_v3 }
 0x322   : > { %v1321_v13 = vmax.f32 %v1305_v14, 0.0 }
 0x323   : > { %v1174_v63 = vmax.f32 %v1158_v4, 0.0  ;;  %v1633_v48 = vmax.f32 %v1617_v32, 0.0 }
 0x324   : > { %v1568_v60 = vmul.f32 %v3165_v38, %v1321_v13  ;;  %v1322_v13 = vmax.f32 %v1306_v36, 0.0 }
 0x325   : > { %v1502_v41 = vmul.f32 %v3133_v19, %v1174_v63  ;;  %v1104_v33 = vpop.permute.xlu1 %1103  ;;  %v1402_v29 = vpop.permute.xlu2 %1401 }
 0x326   : > { %v1142_v49 = vadd.f32 %v1104_v33, %v1045_v0  ;;  %v957_v26 = vpop.permute.xlu0 %956  ;;  %v1601_v30 = vadd.f32 %v1585_v58, %v1568_v60  ;;  %v1504_v0 = vmul.f32 %v3133_v19, %v1176_v2  ;;  %v1569_v33 = vmul.f32 %v3165_v38, %v1322_v13 }
 0x327   : > { %v995_v53 = vadd.f32 %v957_v26, %v898_v57  ;;  %2399 = vset.pattern.permute.xlu0 %v3893_v24  ;;  %v1518_v10 = vadd.f32 %v1502_v41, %v1485_v46  ;;  %v1340_v41 = vmul.f32 %v3055_v39, %v3895_v52  ;;  %v3896_v26 = vld [vmem:[#allocation9_spill] sm:$0xff] }
 0x328   : > { %v1159_v9 = vadd.f32 %v3073_v43, %v1142_v49  ;;  %2397 = vset.pattern.permute.xlu2 %v3893_v24  ;;  %v1618_v54 = vadd.f32 %v3203_v51, %v1601_v30  ;;  %v1193_v49 = vmul.f32 %v3047_v28, %v3895_v52  ;;  %v1341_v30 = vmul.f32 %v3055_v39, %v3896_v26 }
 0x329   : > { %v1012_v35 = vadd.f32 %v3059_v40, %v995_v53  ;;  %2395 = vset.pattern.permute.xlu1 %v3893_v24  ;;  %1778 = vperm.xlu2 %2397, %v1633_v48   ;;  %v1535_v1 = vadd.f32 %v3177_v59, %v1518_v10  ;;  %v900_v48 = vmul.f32 %v3030_v11, %v3896_v26 }
 0x32a   : > { %v1175_v23 = vmax.f32 %v1159_v9, 0.0  ;;  %1773 = vperm.xlu1 %2395, %v1632_v8   ;;  %v1634_v22 = vmax.f32 %v1618_v54, 0.0  ;;  %v1438_v54 = vadd.f32 %v1402_v29, %v1341_v30  ;;  %v1194_v29 = vmul.f32 %v3047_v28, %v3896_v26 }
 0x32b   : > { %v1028_v50 = vmax.f32 %v1012_v35, 0.0  ;;  %v1551_v63 = vmax.f32 %v1535_v1, 0.0  ;;  %v997_v10 = vadd.f32 %v3329_v31, %v900_v48 }
 0x32c   : > { %v1503_v17 = vmul.f32 %v3133_v19, %v1175_v23  ;;  %1783 = vperm.xlu0 %2399, %v1634_v22  }
 0x32d   : > { %v1486_v45 = vmul.f32 %v3118_v44, %v1028_v50  ;;  %v959_v55 = vpop.permute.xlu1 %958  ;;  %v1257_v27 = vpop.permute.xlu2 %1256  ;;  %v1014_v31 = vadd.f32 %v3059_v40, %v997_v10 }
 0x32e   : > { %v996_v56 = vadd.f32 %v959_v55, %v899_v21  ;;  %v1398_v3 = vpop.permute.xlu0 %1397  ;;  %v1455_v21 = vadd.f32 %v3127_v47, %v1438_v54 }
 0x32f   : > { %v1436_v12 = vadd.f32 %v1398_v3, %v1339_v62  ;;  %v1519_v14 = vadd.f32 %v1503_v17, %v1486_v45  ;;  %v1047_v62 = vmul.f32 %v3028_v7, %v3896_v26  ;;  %v3898_v26 = vld [vmem:[#allocation11_spill] sm:$0xff] }
 0x330   : > { %v1013_v4 = vadd.f32 %v3059_v40, %v996_v56  ;;  %v1049_v30 = vmul.f32 %v3028_v7, %v3898_v26 }
 0x331   : > { %v1453_v61 = vadd.f32 %v3127_v47, %v1436_v12  ;;  %2400 = vset.pattern.permute.xlu2 %v3894_v6  ;;  %v1536_v32 = vadd.f32 %v3177_v59, %v1519_v14  ;;  %v1471_v14 = vmax.f32 %v1455_v21, 0.0 }
 0x332   : > { %v1029_v58 = vmax.f32 %v1013_v4, 0.0  ;;  %2398 = vset.pattern.permute.xlu1 %v3894_v6  ;;  %v1030_v4 = vmax.f32 %v1014_v31, 0.0  ;;  %v902_v31 = vmul.f32 %v3030_v11, %v3898_v26 }
 0x333   : > { %v1469_v20 = vmax.f32 %v1453_v61, 0.0  ;;  %1685 = vperm.xlu1 %2398, %v1551_v63   ;;  %v1552_v60 = vmax.f32 %v1536_v32, 0.0 }
 0x334   : > { %v1487_v15 = vmul.f32 %v3118_v44, %v1029_v58  ;;  %2402 = vset.pattern.permute.xlu0 %v3894_v6 }
 0x335   : > { %v1586_v57 = vmul.f32 %v3180_v42, %v1469_v20  ;;  %1690 = vperm.xlu2 %2400, %v1552_v60   ;;  %v1400_v37 = vpop.permute.xlu1 %1399  ;;  %v1112_v13 = vpop.permute.xlu2 %1111  ;;  %v1588_v60 = vmul.f32 %v3180_v42, %v1471_v14 }
 0x336   : > { %v1437_v46 = vadd.f32 %v1400_v37, %v1340_v41  ;;  %v1253_v5 = vpop.permute.xlu0 %1252  ;;  %v1520_v53 = vadd.f32 %v1504_v0, %v1487_v15  ;;  %v3897_v15 = vld [vmem:[#allocation10_spill] sm:$0xff]  ;;  %v1146_v54 = vadd.f32 %v1112_v13, %v1049_v30 }
 0x337   : > { %v1290_v9 = vadd.f32 %v1253_v5, %v1193_v49  ;;  %v1602_v8 = vadd.f32 %v1586_v57, %v1569_v33  ;;  %v1048_v41 = vmul.f32 %v3028_v7, %v3897_v15  ;;  %v1488_v33 = vmul.f32 %v3118_v44, %v1030_v4 }
 0x338   : > { %v1454_v18 = vadd.f32 %v3127_v47, %v1437_v46  ;;  %v1537_v35 = vadd.f32 %v3177_v59, %v1520_v53  ;;  %v901_v49 = vmul.f32 %v3030_v11, %v3897_v15  ;;  %v1195_v48 = vmul.f32 %v3047_v28, %v3897_v15 }
 0x339   : > { %v1307_v52 = vadd.f32 %v3108_v25, %v1290_v9  ;;  %v1619_v23 = vadd.f32 %v3203_v51, %v1602_v8 }
 0x33a   : > { %v1470_v22 = vmax.f32 %v1454_v18, 0.0  ;;  %v1553_v50 = vmax.f32 %v1537_v35, 0.0  ;;  %v1292_v10 = vadd.f32 %v1257_v27, %v1195_v48 }
 0x33b   : > { %v1323_v34 = vmax.f32 %v1307_v52, 0.0  ;;  %2401 = vset.pattern.permute.xlu1 %v3893_v24  ;;  %v1635_v17 = vmax.f32 %v1619_v23, 0.0 }
 0x33c   : > { %v1587_v36 = vmul.f32 %v3180_v42, %v1470_v22  ;;  %1695 = vperm.xlu0 %2402, %v1553_v50  }
 0x33d   : > { %v1570_v45 = vmul.f32 %v3165_v38, %v1323_v34  ;;  %1788 = vperm.xlu1 %2401, %v1635_v17   ;;  %v1255_v55 = vpop.permute.xlu1 %1254  ;;  %2403 = vset.pattern.permute.xlu2 %v3893_v24  ;;  %v967_v34 = vpop.permute.xlu2 %966 }
 0x33e   : > { %v1291_v1 = vadd.f32 %v1255_v55, %v1194_v29  ;;  %v1108_v56 = vpop.permute.xlu0 %1107 }
 0x33f   : > { %v1144_v3 = vadd.f32 %v1108_v56, %v1047_v62  ;;  %v1603_v12 = vadd.f32 %v1587_v36, %v1570_v45  ;;  %v1163_v36 = vadd.f32 %v3073_v43, %v1146_v54  ;;  %v1309_v45 = vadd.f32 %v3108_v25, %v1292_v10 }
 0x340   : > { %v1308_v2 = vadd.f32 %v3108_v25, %v1291_v1  ;;  %v1342_v62 = vmul.f32 %v3055_v39, %v3897_v15 }
 0x341   : > { %v1161_v61 = vadd.f32 %v3073_v43, %v1144_v3  ;;  %v1620_v63 = vadd.f32 %v3203_v51, %v1603_v12  ;;  %v1179_v14 = vmax.f32 %v1163_v36, 0.0  ;;  %v1325_v4 = vmax.f32 %v1309_v45, 0.0 }
 0x342   : > { %v1324_v32 = vmax.f32 %v1308_v2, 0.0 }
 0x343   : > { %v1177_v58 = vmax.f32 %v1161_v61, 0.0  ;;  %v1636_v20 = vmax.f32 %v1620_v63, 0.0  ;;  %v1572_v15 = vmul.f32 %v3165_v38, %v1325_v4 }
 0x344   : > { %v1571_v0 = vmul.f32 %v3165_v38, %v1324_v32  ;;  %2405 = vset.pattern.permute.xlu0 %v3893_v24 }
 0x345   : > { %v1505_v57 = vmul.f32 %v3133_v19, %v1177_v58  ;;  %1793 = vperm.xlu2 %2403, %v1636_v20   ;;  %v1110_v37 = vpop.permute.xlu1 %1109  ;;  %2404 = vset.pattern.permute.xlu1 %v3894_v6  ;;  %v1507_v20 = vmul.f32 %v3133_v19, %v1179_v14 }
 0x346   : > { %v1145_v46 = vadd.f32 %v1110_v37, %v1048_v41  ;;  %v963_v5 = vpop.permute.xlu0 %962  ;;  %v1604_v53 = vadd.f32 %v1588_v60, %v1571_v0  ;;  %v1343_v0 = vmul.f32 %v3055_v39, %v3898_v26  ;;  %v1408_v41 = vpop.permute.xlu2 %1407  ;;  %v1196_v37 = vmul.f32 %v3047_v28, %v3898_v26 }
 0x347   : > { %v998_v9 = vadd.f32 %v963_v5, %v901_v49  ;;  %v1521_v8 = vadd.f32 %v1505_v57, %v1488_v33  ;;  %v3899_v49 = vld [vmem:[#allocation12_spill] sm:$0xff] }
 0x348   : > { %v1162_v18 = vadd.f32 %v3073_v43, %v1145_v46  ;;  %v1621_v35 = vadd.f32 %v3203_v51, %v1604_v53  ;;  %v1344_v30 = vmul.f32 %v3055_v39, %v3899_v49  ;;  %v903_v48 = vmul.f32 %v3030_v11, %v3899_v49 }
 0x349   : > { %v1015_v52 = vadd.f32 %v3059_v40, %v998_v9  ;;  %v1538_v23 = vadd.f32 %v3177_v59, %v1521_v8 }
 0x34a   : > { %v1178_v22 = vmax.f32 %v1162_v18, 0.0  ;;  %v1637_v50 = vmax.f32 %v1621_v35, 0.0  ;;  %v1441_v54 = vadd.f32 %v1408_v41, %v1344_v30  ;;  %v1000_v10 = vadd.f32 %v967_v34, %v903_v48 }
 0x34b   : > { %v1031_v17 = vmax.f32 %v1015_v52, 0.0  ;;  %v1554_v21 = vmax.f32 %v1538_v23, 0.0  ;;  %v1198_v30 = vmul.f32 %v3047_v28, %v3135_v16 }
 0x34c   : > { %v1506_v29 = vmul.f32 %v3133_v19, %v1178_v22  ;;  %1798 = vperm.xlu0 %2405, %v1637_v50  }
 0x34d   : > { %v1489_v27 = vmul.f32 %v3118_v44, %v1031_v17  ;;  %1700 = vperm.xlu1 %2404, %v1554_v21   ;;  %v965_v55 = vpop.permute.xlu1 %964  ;;  %2406 = vset.pattern.permute.xlu2 %v3894_v6  ;;  %v1458_v21 = vadd.f32 %v3127_v47, %v1441_v54 }
 0x34e   : > { %v999_v1 = vadd.f32 %v965_v55, %v902_v31  ;;  %v1404_v56 = vpop.permute.xlu0 %1403  ;;  %v1017_v31 = vadd.f32 %v3059_v40, %v1000_v10 }
 0x34f   : > { %v1439_v3 = vadd.f32 %v1404_v56, %v1342_v62  ;;  %v1522_v12 = vadd.f32 %v1506_v29, %v1489_v27  ;;  %v1197_v29 = vmul.f32 %v3047_v28, %v3899_v49  ;;  %v1050_v27 = vmul.f32 %v3028_v7, %v3899_v49 }
 0x350   : > { %v1016_v2 = vadd.f32 %v3059_v40, %v999_v1  ;;  %v1033_v14 = vmax.f32 %v1017_v31, 0.0 }
 0x351   : > { %v1456_v13 = vadd.f32 %v3127_v47, %v1439_v3  ;;  %v1539_v61 = vadd.f32 %v3177_v59, %v1522_v12  ;;  %v1474_v3 = vmax.f32 %v1458_v21, 0.0 }
 0x352   : > { %v1032_v63 = vmax.f32 %v1016_v2, 0.0 }
 0x353   : > { %v1472_v32 = vmax.f32 %v1456_v13, 0.0  ;;  %v1555_v58 = vmax.f32 %v1539_v61, 0.0 }
 0x354   : > { %v1490_v60 = vmul.f32 %v3118_v44, %v1032_v63  ;;  %2408 = vset.pattern.permute.xlu0 %v3894_v6 }
 0x355   : > { %v1589_v33 = vmul.f32 %v3180_v42, %v1472_v32  ;;  %1705 = vperm.xlu2 %2406, %v1555_v58   ;;  %v1406_v57 = vpop.permute.xlu1 %1405  ;;  %2407 = vset.pattern.permute.xlu1 %v3893_v24  ;;  %v1591_v32 = vmul.f32 %v3180_v42, %v1474_v3  ;;  %v1263_v58 = vpop.permute.xlu2 %1262  ;;  %v3500_v3 = vld [vmem:[%s3870_s8 + $0x2] ss:$0 sm:$0xff] }
 0x356   : > { %v1440_v46 = vadd.f32 %v1406_v57, %v1343_v0  ;;  %v1259_v5 = vpop.permute.xlu0 %1258  ;;  %v1523_v53 = vadd.f32 %v1507_v20, %v1490_v60  ;;  %v1051_v60 = vmul.f32 %v3028_v7, %v3135_v16  ;;  %v1491_v0 = vmul.f32 %v3118_v44, %v1033_v14 }
 0x357   : > { %v1293_v9 = vadd.f32 %v1259_v5, %v1196_v37  ;;  %v1605_v8 = vadd.f32 %v1589_v33, %v1572_v15  ;;  %v904_v33 = vmul.f32 %v3030_v11, %v3135_v16  ;;  %v1295_v48 = vadd.f32 %v1263_v58, %v1198_v30 }
 0x358   : > { %v1457_v18 = vadd.f32 %v3127_v47, %v1440_v46  ;;  %v1540_v35 = vadd.f32 %v3177_v59, %v1523_v53 }
 0x359   : > { %v1310_v26 = vadd.f32 %v3108_v25, %v1293_v9  ;;  %v1622_v52 = vadd.f32 %v3203_v51, %v1605_v8  ;;  %v1312_v28 = vadd.f32 %v3108_v25, %v1295_v48 }
 0x35a   : > { %v1473_v23 = vmax.f32 %v1457_v18, 0.0  ;;  %v1556_v22 = vmax.f32 %v1540_v35, 0.0 }
 0x35b   : > { %v1326_v50 = vmax.f32 %v1310_v26, 0.0  ;;  %v1638_v17 = vmax.f32 %v1622_v52, 0.0 }
 0x35c   : > { %v1590_v36 = vmul.f32 %v3180_v42, %v1473_v23  ;;  %1710 = vperm.xlu0 %2408, %v1556_v22  }
 0x35d   : > { %v1573_v34 = vmul.f32 %v3165_v38, %v1326_v50  ;;  %1803 = vperm.xlu1 %2407, %v1638_v17   ;;  %v1261_v45 = vpop.permute.xlu1 %1260  ;;  %2409 = vset.pattern.permute.xlu2 %v3893_v24  ;;  %v1328_v17 = vmax.f32 %v1312_v28, 0.0 }
 0x35e   : > { %v1294_v55 = vadd.f32 %v1261_v45, %v1197_v29  ;;  %v1114_v62 = vpop.permute.xlu0 %1113 }
 0x35f   : > { %v1147_v1 = vadd.f32 %v1114_v62, %v1050_v27  ;;  %v1606_v56 = vadd.f32 %v1590_v36, %v1573_v34 }
 0x360   : > { %v1311_v12 = vadd.f32 %v3108_v25, %v1294_v55 }
 0x361   : > { %v1164_v2 = vadd.f32 %v3073_v43, %v1147_v1  ;;  %v1623_v4 = vadd.f32 %v3203_v51, %v1606_v56  ;;  %v1872_v1 = vlaneseq }
 0x362   : > { %v1327_v13 = vmax.f32 %v1311_v12, 0.0 }
 0x363   : > { %v1180_v61 = vmax.f32 %v1164_v2, 0.0  ;;  %v1639_v63 = vmax.f32 %v1623_v4, 0.0  ;;  %v3502_v12 = vand.u32 127, %v1872_v1 }
 0x364   : > { %v1574_v20 = vmul.f32 %v3165_v38, %v1327_v13  ;;  %2411 = vset.pattern.permute.xlu0 %v3893_v24 }
 0x365   : > { %v1508_v15 = vmul.f32 %v3133_v19, %v1180_v61  ;;  %1808 = vperm.xlu2 %2409, %v1639_v63   ;;  %v1116_v41 = vpop.permute.xlu1 %1115  ;;  %2410 = vset.pattern.permute.xlu1 %v3894_v6  ;;  %vm1874_vm1 = vcmp.lt.s32.totalorder %v3502_v12, 4 }
 0x366   : > { %v1148_v57 = vadd.f32 %v1116_v41, %v1051_v60  ;;  %v969_v37 = vpop.permute.xlu0 %968  ;;  %v1607_v49 = vadd.f32 %v1591_v32, %v1574_v20 }
 0x367   : > { %v1001_v7 = vadd.f32 %v969_v37, %v904_v33  ;;  %v1524_v46 = vadd.f32 %v1508_v15, %v1491_v0 }
 0x368   : > { %v1165_v5 = vadd.f32 %v3073_v43, %v1148_v57  ;;  %v1624_v53 = vadd.f32 %v3203_v51, %v1607_v49  ;;  %v1345_v43 = vmul.f32 %v3055_v39, %v3135_v16 }
 0x369   : > { %v1018_v9 = vadd.f32 %v3059_v40, %v1001_v7  ;;  %v1541_v8 = vadd.f32 %v3177_v59, %v1524_v46  ;;  %v1651_v40 = vpop.permute.xlu2 %1650 }
 0x36a   : > { %v1181_v11 = vmax.f32 %v1165_v5, 0.0  ;;  %v1640_v54 = vmax.f32 %v1624_v53, 0.0 }
 0x36b   : > { %v1034_v18 = vmax.f32 %v1018_v9, 0.0  ;;  %v1557_v35 = vmax.f32 %v1541_v8, 0.0 }
 0x36c   : > { %v1509_v10 = vmul.f32 %v3133_v19, %v1181_v11  ;;  %1813 = vperm.xlu0 %2411, %v1640_v54  }
 0x36d   : > { %v1492_v26 = vmul.f32 %v3118_v44, %v1034_v18  ;;  %1715 = vperm.xlu1 %2410, %v1557_v35   ;;  %v1646_v52 = vpop.permute.xlu1 %1645  ;;  %2412 = vset.pattern.permute.xlu2 %v3894_v6  ;;  %v1575_v44 = vmul.f32 %v3165_v38, %v1328_v17  ;;  %v3493_v38 = vld [vmem:[%s3870_s8 + $0x1] ss:$0 sm:$0xff] }
 0x36e   : > { %v1410_v23 = vpop.permute.xlu0 %1409 }
 0x36f   : > { %v1442_v22 = vadd.f32 %v1410_v23, %v1345_v43  ;;  %v1525_v50 = vadd.f32 %v1509_v10, %v1492_v26 }
 0x371   : > { %v1459_v21 = vadd.f32 %v3127_v47, %v1442_v22  ;;  %v1542_v19 = vadd.f32 %v3177_v59, %v1525_v50  ;;  %v1754_v6 = vpop.permute.xlu2 %1753  ;;  %v3488_v59 = vld [vmem:[%s3870_s8] ss:$0 sm:$0xff] }
 0x372   : > { %v1724_v13 = vmul.f32 %v3488_v59, %v1646_v52  ;;  %v1824_v30 = vmul.f32 %v3493_v38, %v1754_v6 }
 0x373   : > { %v1475_v36 = vmax.f32 %v1459_v21, 0.0  ;;  %v1558_v25 = vmax.f32 %v1542_v19, 0.0 }
 0x375   : > { %v1592_v29 = vmul.f32 %v3180_v42, %v1475_v36  ;;  %1720 = vperm.xlu2 %2412, %v1558_v25   ;;  %2413 = vset.pattern.permute.xlu1 %v3893_v24 }
 0x376   : > { %v1744_v45 = vpop.permute.xlu0 %1743 }
 0x377   : > { %v1749_v39 = vpop.permute.xlu1 %1748  ;;  %v1608_v16 = vadd.f32 %v1592_v29, %v1575_v44  ;;  %v1822_v14 = vmul.f32 %v3493_v38, %v1744_v45 }
 0x378   : > { %v1823_v24 = vmul.f32 %v3493_v38, %v1749_v39 }
 0x379   : > { %v1625_v31 = vadd.f32 %v3203_v51, %v1608_v16  ;;  %v1666_v27 = vpop.permute.xlu2 %1665  ;;  %v1725_v51 = vmul.f32 %v3488_v59, %v1651_v40  ;;  %v1838_v58 = vadd.f32 %v1822_v14, %v1724_v13 }
 0x37a   : > { %v1728_v35 = vmul.f32 %v3488_v59, %v1666_v27 }
 0x37b   : > { %v1641_v34 = vmax.f32 %v1625_v31, 0.0  ;;  %v1839_v56 = vadd.f32 %v1823_v24, %v1725_v51  ;;  %v3520_v41 = vadd.f32 %v3500_v3, %v1838_v58 }
 0x37d   : > { %1818 = vperm.xlu1 %2413, %v1641_v34   ;;  %v3506_v4 = vadd.f32 %v3500_v3, %v1839_v56  ;;  %v3531_v5 = vsel %vm1874_vm1, %v3520_v41, -inf }
 0x37f   : > { %v1656_v42 = vpop.permute.xlu0 %1655  ;;  %v3515_v20 = vsel %vm1874_vm1, %v3506_v4, -inf }
 0x380   : > { %v1661_v47 = vpop.permute.xlu1 %1660  ;;  %v1726_v57 = vmul.f32 %v3488_v59, %v1656_v42 }
 0x381   : > { %v1764_v62 = vpop.permute.xlu2 %1763  ;;  %v1727_v37 = vmul.f32 %v3488_v59, %v1661_v47 }
 0x382   : > { %v1840_v48 = vadd.f32 %v1824_v30, %v1726_v57  ;;  %v1826_v8 = vmul.f32 %v3493_v38, %v1764_v62 }
 0x384   : > { %v3546_v18 = vadd.f32 %v3500_v3, %v1840_v48  ;;  %v1842_v26 = vadd.f32 %v1826_v8, %v1728_v35 }
 0x386   : > { %v3561_v50 = vsel %vm1874_vm1, %v3546_v18, -inf  ;;  %v3566_v36 = vadd.f32 %v3500_v3, %v1842_v26 }
 0x388   : > { %v1769_v2 = vpop.permute.xlu0 %1768  ;;  %v3584_v6 = vsel %vm1874_vm1, %v3566_v36, -inf }
 0x389   : > { %v1827_v63 = vmul.f32 %v3493_v38, %v1769_v2  ;;  %v1676_v60 = vpop.permute.xlu2 %1675 }
 0x38a   : > { %v1759_v55 = vpop.permute.xlu1 %1758  ;;  %v1730_v28 = vmul.f32 %v3488_v59, %v1676_v60 }
 0x38b   : > { %v1825_v15 = vmul.f32 %v3493_v38, %v1759_v55 }
 0x38d   : > { %v1841_v46 = vadd.f32 %v1825_v15, %v1727_v37 }
 0x38f   : > { %v3542_v11 = vadd.f32 %v3500_v3, %v1841_v46 }
 0x391   : > { %v1681_v49 = vpop.permute.xlu0 %1680  ;;  %v1779_v9 = vpop.permute.xlu2 %1778  ;;  %v3553_v52 = vsel %vm1874_vm1, %v3542_v11, -inf }
 0x392   : > { %v1731_v19 = vmul.f32 %v3488_v59, %v1681_v49  ;;  %v1829_v29 = vmul.f32 %v3493_v38, %v1779_v9 }
 0x393   : > { %v1671_v61 = vpop.permute.xlu1 %1670 }
 0x394   : > { %v1729_v32 = vmul.f32 %v3488_v59, %v1671_v61  ;;  %v1845_v16 = vadd.f32 %v1829_v29, %v1731_v19 }
 0x396   : > { %v1843_v0 = vadd.f32 %v1827_v63, %v1729_v32  ;;  %1893 = vmax.xlane.f32.xlu0 %v3515_v20  ;;  %v3597_v55 = vadd.f32 %v3500_v3, %v1845_v16 }
 0x398   : > { %v3523_v33 = vadd.f32 %v3500_v3, %v1843_v0  ;;  %v3606_v14 = vsel %vm1874_vm1, %v3597_v55, -inf }
 0x399   : > { %v1691_v17 = vpop.permute.xlu2 %1690 }
 0x39a   : > { %v3536_v53 = vsel %vm1874_vm1, %v3523_v33, -inf  ;;  %v1733_v47 = vmul.f32 %v3488_v59, %v1691_v17 }
 0x39c   : > { %v1774_v7 = vpop.permute.xlu1 %1773 }
 0x39d   : > { %v1828_v54 = vmul.f32 %v3493_v38, %v1774_v7 }
 0x39e   : > { %1891 = vmax.xlane.f32.xlu2 %v3531_v5  ;;  %1901 = vmax.xlane.f32.xlu0 %v3536_v53  ;;  %v1784_v10 = vpop.permute.xlu0 %1783 }
 0x39f   : > { %v1844_v40 = vadd.f32 %v1828_v54, %v1730_v28  ;;  %v1830_v23 = vmul.f32 %v3493_v38, %v1784_v10 }
 0x3a1   : > { %v3572_v44 = vadd.f32 %v3500_v3, %v1844_v40  ;;  %v1794_v27 = vpop.permute.xlu2 %1793 }
 0x3a2   : > { %v1832_v62 = vmul.f32 %v3493_v38, %v1794_v27 }
 0x3a3   : > { %v3590_v34 = vsel %vm1874_vm1, %v3572_v44, -inf }
 0x3a5   : > { %v1686_v43 = vpop.permute.xlu1 %1685 }
 0x3a6   : > { %v1732_v22 = vmul.f32 %v3488_v59, %v1686_v43  ;;  %1897 = vmax.xlane.f32.xlu2 %v3553_v52 }
 0x3a7   : > { %1895 = vmax.xlane.f32.xlu1 %v3561_v50 }
 0x3a8   : > { %v1846_v21 = vadd.f32 %v1830_v23, %v1732_v22 }
 0x3aa   : > { %v3569_v25 = vadd.f32 %v3500_v3, %v1846_v21 }
 0x3ac   : > { %v3578_v39 = vsel %vm1874_vm1, %v3569_v25, -inf }
 0x3ad   : > { %1907 = vmax.xlane.f32.xlu0 %v3578_v39 }
 0x3ae   : > { %1899 = vmax.xlane.f32.xlu2 %v3584_v6  ;;  %v1696_v31 = vpop.permute.xlu0 %1695 }
 0x3af   : > { %1903 = vmax.xlane.f32.xlu1 %v3590_v34  ;;  %v1789_v45 = vpop.permute.xlu1 %1788  ;;  %v1734_v24 = vmul.f32 %v3488_v59, %v1696_v31  ;;  %v1706_v15 = vpop.permute.xlu2 %1705 }
 0x3b0   : > { %v1831_v42 = vmul.f32 %v3493_v38, %v1789_v45  ;;  %v1736_v9 = vmul.f32 %v3488_v59, %v1706_v15 }
 0x3b1   : > { %v1848_v56 = vadd.f32 %v1832_v62, %v1734_v24 }
 0x3b2   : > { %v1847_v51 = vadd.f32 %v1831_v42, %v1733_v47 }
 0x3b3   : > { %v3616_v13 = vadd.f32 %v3500_v3, %v1848_v56 }
 0x3b4   : > { %v3601_v1 = vadd.f32 %v3500_v3, %v1847_v51 }
 0x3b5   : > { %v3621_v61 = vsel %vm1874_vm1, %v3616_v13, -inf }
 0x3b6   : > { %1905 = vmax.xlane.f32.xlu2 %v3606_v14  ;;  %v3612_v2 = vsel %vm1874_vm1, %v3601_v1, -inf }
 0x3b7   : > { %1909 = vmax.xlane.f32.xlu1 %v3612_v2 }
 0x3be   : > { %1911 = vmax.xlane.f32.xlu2 %v3621_v61  ;;  %v1799_v63 = vpop.permute.xlu0 %1798 }
 0x3bf   : > { %v1833_v32 = vmul.f32 %v3493_v38, %v1799_v63  ;;  %v1701_v58 = vpop.permute.xlu1 %1700  ;;  %v1809_v49 = vpop.permute.xlu2 %1808 }
 0x3c0   : > { %v1735_v60 = vmul.f32 %v3488_v59, %v1701_v58  ;;  %v1835_v7 = vmul.f32 %v3493_v38, %v1809_v49 }
 0x3c2   : > { %v1849_v0 = vadd.f32 %v1833_v32, %v1735_v60 }
 0x3c4   : > { %v3627_v57 = vadd.f32 %v3500_v3, %v1849_v0 }
 0x3c6   : > { %v3632_v37 = vsel %vm1874_vm1, %v3627_v57, -inf }
 0x3c7   : > { %1913 = vmax.xlane.f32.xlu0 %v3632_v37 }
 0x3ce   : > { %v1711_v30 = vpop.permute.xlu0 %1710 }
 0x3cf   : > { %v1737_v46 = vmul.f32 %v3488_v59, %v1711_v30  ;;  %v1804_v48 = vpop.permute.xlu1 %1803  ;;  %v1721_v16 = vpop.permute.xlu2 %1720 }
 0x3d0   : > { %v1834_v8 = vmul.f32 %v3493_v38, %v1804_v48  ;;  %v1739_v45 = vmul.f32 %v3488_v59, %v1721_v16 }
 0x3d1   : > { %v1851_v54 = vadd.f32 %v1835_v7, %v1737_v46 }
 0x3d2   : > { %v1850_v35 = vadd.f32 %v1834_v8, %v1736_v9 }
 0x3d3   : > { %v3640_v10 = vadd.f32 %v3500_v3, %v1851_v54 }
 0x3d4   : > { %v3643_v28 = vadd.f32 %v3500_v3, %v1850_v35 }
 0x3d5   : > { %v3648_v26 = vsel %vm1874_vm1, %v3640_v10, -inf }
 0x3d6   : > { %1917 = vmax.xlane.f32.xlu2 %v3648_v26  ;;  %v3654_v43 = vsel %vm1874_vm1, %v3643_v28, -inf }
 0x3d7   : > { %1915 = vmax.xlane.f32.xlu1 %v3654_v43 }
 0x3de   : > { %v1814_v40 = vpop.permute.xlu0 %1813 }
 0x3df   : > { %v1836_v23 = vmul.f32 %v3493_v38, %v1814_v40  ;;  %v1716_v22 = vpop.permute.xlu1 %1715 }
 0x3e0   : > { %v1738_v17 = vmul.f32 %v3488_v59, %v1716_v22 }
 0x3e2   : > { %v1852_v21 = vadd.f32 %v1836_v23, %v1738_v17 }
 0x3e4   : > { %v3660_v19 = vadd.f32 %v3500_v3, %v1852_v21 }
 0x3e6   : > { %v3665_v29 = vsel %vm1874_vm1, %v3660_v19, -inf }
 0x3e7   : > { %1919 = vmax.xlane.f32.xlu0 %v3665_v29 }
 0x3ef   : > { %v1819_v31 = vpop.permute.xlu1 %1818 }
 0x3f0   : > { %v1837_v47 = vmul.f32 %v3493_v38, %v1819_v31 }
 0x3f2   : > { %v1853_v27 = vadd.f32 %v1837_v47, %v1739_v45 }
 0x3f4   : > { %v3671_v42 = vadd.f32 %v3500_v3, %v1853_v27 }
 0x3f6   : > { %v3676_v24 = vsel %vm1874_vm1, %v3671_v42, -inf }
 0x3f7   : > { %1921 = vmax.xlane.f32.xlu1 %v3676_v24 }
 0x409   : > { %v1894_v51 = vpop.xlane.xlu0 %1893 }
 0x40a   : > { %v1924_v62 = vsub.f32 %v3515_v20, %v1894_v51 }
 0x40c   : > { %v1941_v56 = vmul.f32 1.442695, %v1924_v62 }
 0x40e   : > { %2420 = vpow2.f32 %v1941_v56 }
 0x411   : > { %v1892_v63 = vpop.xlane.xlu2 %1891  ;;  %v1902_v58 = vpop.xlane.xlu0 %1901 }
 0x412   : > { %v1923_v59 = vsub.f32 %v3531_v5, %v1892_v63  ;;  %v1928_v30 = vsub.f32 %v3536_v53, %v1902_v58 }
 0x414   : > { %v3681_v38 = vpop.eup %2420  ;;  %v1939_v32 = vmul.f32 1.442695, %v1923_v59  ;;  %v1949_v5 = vmul.f32 1.442695, %v1928_v30 }
 0x415   : > { %1973 = vadd.xlane.f32.xlu0 %v3681_v38 }
 0x416   : > { %2422 = vpow2.f32 %v1939_v32 }
 0x419   : > { %v1898_v3 = vpop.xlane.xlu2 %1897 }
 0x41a   : > { %v1926_v60 = vsub.f32 %v3553_v52, %v1898_v3  ;;  %v1896_v0 = vpop.xlane.xlu1 %1895 }
 0x41b   : > { %v1925_v15 = vsub.f32 %v3561_v50, %v1896_v0 }
 0x41c   : > { %v3686_v49 = vpop.eup %2422  ;;  %v1945_v20 = vmul.f32 1.442695, %v1926_v60 }
 0x41d   : > { %v1943_v7 = vmul.f32 1.442695, %v1925_v15  ;;  %1971 = vadd.xlane.f32.xlu2 %v3686_v49 }
 0x41e   : > { %2424 = vpow2.f32 %v1945_v20 }
 0x41f   : > { %2426 = vpow2.f32 %v1943_v7 }
 0x420   : > { %v1908_v48 = vpop.xlane.xlu0 %1907  ;;  %2428 = vpow2.f32 %v1949_v5 }
 0x421   : > { %v1900_v46 = vpop.xlane.xlu2 %1899  ;;  %v1931_v53 = vsub.f32 %v3578_v39, %v1908_v48 }
 0x422   : > { %v1927_v9 = vsub.f32 %v3584_v6, %v1900_v46  ;;  %v1904_v8 = vpop.xlane.xlu1 %1903 }
 0x423   : > { %v1929_v52 = vsub.f32 %v3590_v34, %v1904_v8  ;;  %v1955_v23 = vmul.f32 1.442695, %v1931_v53 }
 0x424   : > { %v3692_v54 = vpop.eup %2424  ;;  %v1947_v50 = vmul.f32 1.442695, %v1927_v9 }
 0x425   : > { %v3694_v35 = vpop.eup %2426  ;;  %v1951_v40 = vmul.f32 1.442695, %v1929_v52  ;;  %1977 = vadd.xlane.f32.xlu2 %v3692_v54 }
 0x426   : > { %2430 = vpow2.f32 %v1947_v50  ;;  %1975 = vadd.xlane.f32.xlu1 %v3694_v35  ;;  %v3700_v17 = vpop.eup %2428 }
 0x427   : > { %2432 = vpow2.f32 %v1951_v40 }
 0x428   : > { %2434 = vpow2.f32 %v1955_v23 }
 0x429   : > { %v1906_v6 = vpop.xlane.xlu2 %1905 }
 0x42a   : > { %v1930_v22 = vsub.f32 %v3606_v14, %v1906_v6  ;;  %v1910_v34 = vpop.xlane.xlu1 %1909 }
 0x42b   : > { %v1932_v21 = vsub.f32 %v3612_v2, %v1910_v34 }
 0x42c   : > { %v3703_v16 = vpop.eup %2430  ;;  %v1953_v31 = vmul.f32 1.442695, %v1930_v22 }
 0x42d   : > { %v3705_v39 = vpop.eup %2432  ;;  %v1957_v45 = vmul.f32 1.442695, %v1932_v21  ;;  %1979 = vadd.xlane.f32.xlu0 %v3703_v16 }
 0x42e   : > { %2436 = vpow2.f32 %v1953_v31  ;;  %1981 = vadd.xlane.f32.xlu1 %v3700_v17  ;;  %1983 = vadd.xlane.f32.xlu2 %v3705_v39  ;;  %v3711_v27 = vpop.eup %2434 }
 0x42f   : > { %2438 = vpow2.f32 %v1957_v45 }
 0x431   : > { %v1912_v14 = vpop.xlane.xlu2 %1911 }
 0x432   : > { %v1933_v47 = vsub.f32 %v3621_v61, %v1912_v14 }
 0x434   : > { %v3713_v2 = vpop.eup %2436  ;;  %v1959_v51 = vmul.f32 1.442695, %v1933_v47 }
 0x435   : > { %v3715_v62 = vpop.eup %2438  ;;  %1985 = vadd.xlane.f32.xlu0 %v3713_v2 }
 0x436   : > { %2440 = vpow2.f32 %v1959_v51  ;;  %1987 = vadd.xlane.f32.xlu1 %v3711_v27  ;;  %1989 = vadd.xlane.f32.xlu2 %v3715_v62 }
 0x43a   : > { %v1914_v56 = vpop.xlane.xlu0 %1913 }
 0x43b   : > { %v1934_v63 = vsub.f32 %v3632_v37, %v1914_v56 }
 0x43c   : > { %v3721_v59 = vpop.eup %2440 }
 0x43d   : > { %v1961_v61 = vmul.f32 1.442695, %v1934_v63  ;;  %1991 = vadd.xlane.f32.xlu0 %v3721_v59 }
 0x43f   : > { %2442 = vpow2.f32 %v1961_v61 }
 0x445   : > { %v3724_v32 = vpop.eup %2442 }
 0x446   : > { %1993 = vadd.xlane.f32.xlu1 %v3724_v32 }
 0x449   : > { %v1918_v3 = vpop.xlane.xlu2 %1917 }
 0x44a   : > { %v1936_v58 = vsub.f32 %v3648_v26, %v1918_v3  ;;  %v1916_v60 = vpop.xlane.xlu1 %1915 }
 0x44b   : > { %v1935_v0 = vsub.f32 %v3654_v43, %v1916_v60 }
 0x44c   : > { %v1965_v15 = vmul.f32 1.442695, %v1936_v58 }
 0x44d   : > { %v1963_v20 = vmul.f32 1.442695, %v1935_v0 }
 0x44e   : > { %2444 = vpow2.f32 %v1965_v15 }
 0x44f   : > { %2446 = vpow2.f32 %v1963_v20 }
 0x454   : > { %v3729_v37 = vpop.eup %2444 }
 0x455   : > { %v3731_v30 = vpop.eup %2446  ;;  %1997 = vadd.xlane.f32.xlu0 %v3729_v37 }
 0x456   : > { %1995 = vadd.xlane.f32.xlu2 %v3731_v30 }
 0x45a   : > { %v1920_v7 = vpop.xlane.xlu0 %1919 }
 0x45b   : > { %v1937_v26 = vsub.f32 %v3665_v29, %v1920_v7 }
 0x45d   : > { %v1967_v5 = vmul.f32 1.442695, %v1937_v26 }
 0x45f   : > { %2448 = vpow2.f32 %v1967_v5 }
 0x465   : > { %v3736_v43 = vpop.eup %2448 }
 0x466   : > { %1999 = vadd.xlane.f32.xlu1 %v3736_v43 }
 0x46a   : > { %v1922_v46 = vpop.xlane.xlu1 %1921 }
 0x46b   : > { %v1938_v48 = vsub.f32 %v3676_v24, %v1922_v46 }
 0x46d   : > { %v1969_v9 = vmul.f32 1.442695, %v1938_v48 }
 0x46f   : > { %2450 = vpow2.f32 %v1969_v9 }
 0x475   : > { %v3740_v8 = vpop.eup %2450 }
 0x476   : > { %2001 = vadd.xlane.f32.xlu2 %v3740_v8 }
 0x488   : > { %v1974_v52 = vpop.xlane.xlu0 %1973 }
 0x489   : > { %2452 = vrcp.f32 %v1974_v52 }
 0x48f   : > { %v2453_v29 = vpop.eup %2452 }
 0x490   : > { %v2020_v50 = vmul.f32 %v2453_v29, %v3681_v38  ;;  %v1972_v53 = vpop.xlane.xlu2 %1971 }
 0x491   : > { %2454 = vrcp.f32 %v1972_v53 }
 0x492   : > { %v2036_v24 = vsel %vm1874_vm1, %v2020_v50, %v3506_v4 }
 0x493   : > { %2052 = vst [vmem:[%s3750_s28 + $0x8] sm:$0xff] %v2036_v24 }
 0x497   : > { %v2455_v40 = vpop.eup %2454 }
 0x498   : > { %v2019_v23 = vmul.f32 %v2455_v40, %v3686_v49  ;;  %v1978_v6 = vpop.xlane.xlu2 %1977 }
 0x499   : > { %2456 = vrcp.f32 %v1978_v6  ;;  %v1976_v22 = vpop.xlane.xlu1 %1975 }
 0x49a   : > { %v2035_v38 = vsel %vm1874_vm1, %v2019_v23, %v3520_v41  ;;  %2458 = vrcp.f32 %v1976_v22 }
 0x49b   : > { %2051 = vst [vmem:[%s3750_s28] sm:$0xff] %v2035_v38 }
 0x49f   : > { %v2457_v4 = vpop.eup %2456 }
 0x4a0   : > { %v2459_v34 = vpop.eup %2458  ;;  %v2022_v21 = vmul.f32 %v2457_v4, %v3692_v54  ;;  %v1980_v31 = vpop.xlane.xlu0 %1979 }
 0x4a1   : > { %v2021_v45 = vmul.f32 %v2459_v34, %v3694_v35  ;;  %2460 = vrcp.f32 %v1980_v31  ;;  %v1984_v49 = vpop.xlane.xlu2 %1983  ;;  %v1982_v14 = vpop.xlane.xlu1 %1981 }
 0x4a2   : > { %v2038_v47 = vsel %vm1874_vm1, %v2022_v21, %v3542_v11  ;;  %2462 = vrcp.f32 %v1984_v49 }
 0x4a3   : > { %2054 = vst [vmem:[%s3750_s28 + $0x18] sm:$0xff] %v2038_v47  ;;  %v2037_v41 = vsel %vm1874_vm1, %v2021_v45, %v3546_v18  ;;  %2464 = vrcp.f32 %v1982_v14 }
 0x4a4   : > { %2053 = vst [vmem:[%s3750_s28 + $0x10] sm:$0xff] %v2037_v41 }
 0x4a7   : > { %v2461_v54 = vpop.eup %2460 }
 0x4a8   : > { %v2463_v51 = vpop.eup %2462  ;;  %v2023_v35 = vmul.f32 %v2461_v54, %v3703_v16  ;;  %v1986_v56 = vpop.xlane.xlu0 %1985 }
 0x4a9   : > { %v2465_v63 = vpop.eup %2464  ;;  %v2025_v61 = vmul.f32 %v2463_v51, %v3705_v39  ;;  %2466 = vrcp.f32 %v1986_v56  ;;  %v1990_v11 = vpop.xlane.xlu2 %1989 }
 0x4aa   : > { %v1988_v3 = vpop.xlane.xlu1 %1987  ;;  %v2039_v58 = vsel %vm1874_vm1, %v2023_v35, %v3566_v36  ;;  %v2024_v18 = vmul.f32 %v2465_v63, %v3700_v17  ;;  %2468 = vrcp.f32 %v1990_v11 }
 0x4ab   : > { %2055 = vst [vmem:[%s3750_s28 + $0x20] sm:$0xff] %v2039_v58  ;;  %v2041_v16 = vsel %vm1874_vm1, %v2025_v61, %v3572_v44  ;;  %2470 = vrcp.f32 %v1988_v3 }
 0x4ac   : > { %2057 = vst [vmem:[%s3750_s28 + $0x30] sm:$0xff] %v2041_v16  ;;  %v2040_v39 = vsel %vm1874_vm1, %v2024_v18, %v3523_v33 }
 0x4ad   : > { %2056 = vst [vmem:[%s3750_s28 + $0x28] sm:$0xff] %v2040_v39 }
 0x4af   : > { %v2467_v60 = vpop.eup %2466 }
 0x4b0   : > { %v2469_v36 = vpop.eup %2468  ;;  %v2026_v17 = vmul.f32 %v2467_v60, %v3713_v2  ;;  %v1992_v0 = vpop.xlane.xlu0 %1991 }
 0x4b1   : > { %v2471_v15 = vpop.eup %2470  ;;  %v2028_v20 = vmul.f32 %v2469_v36, %v3715_v62  ;;  %2472 = vrcp.f32 %v1992_v0 }
 0x4b2   : > { %v2042_v44 = vsel %vm1874_vm1, %v2026_v17, %v3597_v55  ;;  %v2027_v7 = vmul.f32 %v2471_v15, %v3711_v27 }
 0x4b3   : > { %2058 = vst [vmem:[%s3750_s28 + $0x38] sm:$0xff] %v2042_v44  ;;  %v2044_v33 = vsel %vm1874_vm1, %v2028_v20, %v3601_v1 }
 0x4b4   : > { %2060 = vst [vmem:[%s3750_s28 + $0x48] sm:$0xff] %v2044_v33  ;;  %v2043_v2 = vsel %vm1874_vm1, %v2027_v7, %v3569_v25 }
 0x4b5   : > { %2059 = vst [vmem:[%s3750_s28 + $0x40] sm:$0xff] %v2043_v2 }
 0x4b7   : > { %v2473_v62 = vpop.eup %2472 }
 0x4b8   : > { %v2029_v26 = vmul.f32 %v2473_v62, %v3721_v59 }
 0x4b9   : > { %v1994_v5 = vpop.xlane.xlu1 %1993 }
 0x4ba   : > { %v2045_v55 = vsel %vm1874_vm1, %v2029_v26, %v3616_v13  ;;  %2474 = vrcp.f32 %v1994_v5 }
 0x4bb   : > { %2061 = vst [vmem:[%s3750_s28 + $0x50] sm:$0xff] %v2045_v55 }
 0x4c0   : > { %v2475_v27 = vpop.eup %2474 }
 0x4c1   : > { %v2030_v1 = vmul.f32 %v2475_v27, %v3724_v32 }
 0x4c3   : > { %v2046_v25 = vsel %vm1874_vm1, %v2030_v1, %v3627_v57 }
 0x4c4   : > { %2062 = vst [vmem:[%s3750_s28 + $0x58] sm:$0xff] %v2046_v25 }
 0x4c8   : > { %v1998_v46 = vpop.xlane.xlu0 %1997 }
 0x4c9   : > { %2476 = vrcp.f32 %v1998_v46  ;;  %v1996_v59 = vpop.xlane.xlu2 %1995 }
 0x4ca   : > { %2478 = vrcp.f32 %v1996_v59 }
 0x4cf   : > { %v2477_v48 = vpop.eup %2476 }
 0x4d0   : > { %v2479_v13 = vpop.eup %2478  ;;  %v2032_v9 = vmul.f32 %v2477_v48, %v3729_v37 }
 0x4d1   : > { %v2031_v52 = vmul.f32 %v2479_v13, %v3731_v30 }
 0x4d2   : > { %v2048_v32 = vsel %vm1874_vm1, %v2032_v9, %v3640_v10 }
 0x4d3   : > { %2064 = vst [vmem:[%s3750_s28 + $0x68] sm:$0xff] %v2048_v32  ;;  %v2047_v57 = vsel %vm1874_vm1, %v2031_v52, %v3643_v28 }
 0x4d4   : > { %2063 = vst [vmem:[%s3750_s28 + $0x60] sm:$0xff] %v2047_v57 }
 0x4d9   : > { %v2000_v29 = vpop.xlane.xlu1 %1999 }
 0x4da   : > { %2480 = vrcp.f32 %v2000_v29 }
 0x4e0   : > { %v2481_v50 = vpop.eup %2480 }
 0x4e1   : > { %v2033_v37 = vmul.f32 %v2481_v50, %v3736_v43 }
 0x4e3   : > { %v2049_v30 = vsel %vm1874_vm1, %v2033_v37, %v3660_v19 }
 0x4e4   : > { %2065 = vst [vmem:[%s3750_s28 + $0x70] sm:$0xff] %v2049_v30 }
 0x4e9   : > { %v2002_v10 = vpop.xlane.xlu2 %2001 }
 0x4ea   : > { %2482 = vrcp.f32 %v2002_v10 }
 0x4f0   : > { %v2483_v28 = vpop.eup %2482 }
 0x4f1   : > { %v2034_v53 = vmul.f32 %v2483_v28, %v3740_v8 }
 0x4f3   : > { %v2050_v19 = vsel %vm1874_vm1, %v2034_v53, %v3671_v42 }
 0x4f4   : > { %2066 = vst [vmem:[%s3750_s28 + $0x78] sm:$0xff] %v2050_v19 }
 0x4f5   : > { %2526 = shalt.err (!%p2523_p8)
}
 0x4f6   : > { %s2571_s26 = smov 128   ;;  %s2572_s28 = smov 8  }
 0x4f7   : > { %2331 = dma.vmem_to_hbm [thread:$0]  (%p2661_p5), %s2081_s17, 2048, %s2083_s22, %s2068_s13, %s2571_s26, %s2571_s26, %s2572_s28  }
 0x4f8 PF: > { %p2343_p9 = scmp.ge.s32.totalorder %s2565_s12, 2  ;;  %s2097_s21 = sand.u32 1, %s2553_s30  }
 0x4f9   : > { %s2098_s25 = scalar_lea.sflag [#allocation3], %s2097_s21 }
 0x4fa   : > { %p2338_p10 = pnand %p2343_p9, %p2665_p6 }
 0x4fc   : > { %p2339_p11 = pneg %p2338_p10 }
 0x4fe   : > { %2548 = dma.done.wait (%p2339_p11), %s2098_s25, 2048  }
 0x4ff   : > { %2550 = vsyncadd (%p2339_p11), %s2098_s25, 4294965248  ;;  %p20_p12 = scmp.ge.s32.totalorder %s2648_s15, 4   ;;  %s3900_s30 = smov %s2557_s10 }
 0x500   : > { %s3901_s10 = smov %s2561_s11  ;;  %s3902_s11 = smov %s2659_s18 }
 0x501   : > { %s3903_s12 = smov %s2648_s15  ;;  %22 = sbr.rel (!%p20_p12) target bundleno = 4 (0x4), region = 96 }
 0x506   :  { %2104 = vsyncpa [#allocation3], 1 }
 0x507   :  { %2106 = vsyncpa [#allocation3 + $0x1], 1 }
 0x508   :  { %2107 = vsyncpa [#allocation4], 1 }
 0x509   :  { %2109 = vsyncpa [#allocation4 + $0x1], 1 }

</bundles_post_ra>
